<compile_context>
chip_gen: v6e
topology: v6e:2x2x1
jax: 0.10.0
libtpu: 0.0.40
codegen_flags: <defaults>
</compile_context>

<pallas_src>
import functools

import jax
import jax.numpy as jnp
from jax import lax
from jax.experimental import pallas as pl
from jax.experimental.pallas import tpu as pltpu

LANE = 128


def _round_up(n, m=LANE):
    return ((n + m - 1) // m) * m


def _pick_th(h, w):
    """Row-band height: a divisor of H (=> no M padding) giving a reasonable
    flattened matmul M (<= ~4096 rows) and >=2 bands when that is sensible."""
    divs = [d for d in range(1, h + 1) if h % d == 0]
    proper = [d for d in divs if d < h and d * w >= 64]
    cands = proper or [h]
    within = [d for d in cands if d * w <= 4096] or [min(cands)]
    return max(within)


def _vmem_limit_bytes():
    """Generation-aware VMEM budget: ~3/4 of per-core VMEM (128 MiB on
    v5e/v6e, 64 MiB on v7x).  Falls back to a v7x-safe 48 MiB."""
    try:
        cap = int(getattr(pltpu.get_tpu_info(), "vmem_capacity_bytes", 0) or 0)
    except Exception:
        cap = 0
    if cap <= 0:
        cap = 64 * 1024 * 1024
    return max(32 * 1024 * 1024, (cap * 3) // 4)


@functools.lru_cache(maxsize=1)
def _buffered1_ok():
    """Probe whether single-buffered grid-invariant blocks (pl.Buffered(1))
    are supported by this runtime; keeps the main kernel robust either way."""
    try:
        def _probe(x_ref, o_ref):
            o_ref[...] = x_ref[...] + 0.0

        spec = pl.BlockSpec((8, LANE), lambda i: (0, 0),
                            pipeline_mode=pl.Buffered(1))
        fn = pl.pallas_call(
            _probe,
            out_shape=jax.ShapeDtypeStruct((16, LANE), jnp.float32),
            grid=(2,),
            in_specs=[spec],
            out_specs=pl.BlockSpec((8, LANE), lambda i: (i, 0)))
        jax.block_until_ready(fn(jnp.ones((8, LANE), jnp.float32)))
        return True
    except Exception:
        return False


def _const_spec(block_shape, index_map):
    """BlockSpec for a grid-invariant block: single-buffered when supported
    (don't waste VMEM double-buffering weights that never change)."""
    if _buffered1_ok():
        return pl.BlockSpec(block_shape, index_map, pipeline_mode=pl.Buffered(1))
    return pl.BlockSpec(block_shape, index_map)


# ---------------------------------------------------------------------------
# Fully fused Bottleneck kernel: one (image, row-band) per grid step.
# ---------------------------------------------------------------------------
def _bottleneck_kernel(x_ref, w1_ref, b1_ref, w2_ref, b2_ref, w3_ref, b3_ref,
                       *rest, h, w, th, with_preact):
    if with_preact:
        o_ref, pre_ref, slab_ref = rest
    else:
        o_ref, slab_ref = rest
        pre_ref = None

    nb = pl.num_programs(1)
    b = pl.program_id(1)
    cinp = x_ref.shape[-1]
    widp = w1_ref.shape[-1]
    coutp = w3_ref.shape[-1]

    r0 = b * th

    # ---- conv1 (bn1 scale folded) + relu for the band and its 1-row halos --
    top_i = jnp.maximum(r0 - 1, 0)
    bot_i = jnp.minimum(r0 + th, h - 1)
    top = x_ref[pl.ds(top_i, 1), :, :]                      # (1,  w, cinp)
    mid = x_ref[pl.ds(r0, th), :, :]                        # (th, w, cinp)
    bot = x_ref[pl.ds(bot_i, 1), :, :]                      # (1,  w, cinp)
    win = jnp.concatenate([top, mid, bot], axis=0)          # (th+2, w, cinp)

    y1 = jnp.dot(win.reshape((th + 2) * w, cinp), w1_ref[...],
                 preferred_element_type=jnp.float32) + b1_ref[...]
    y1 = jnp.maximum(y1, 0.0).reshape(th + 2, w, widp)

    # zero the halo rows that fall outside the image (the 3x3 "padding=1")
    rows = lax.broadcasted_iota(jnp.int32, (th + 2, 1, 1), 0)
    keep = jnp.logical_and(jnp.logical_or(rows > 0, b > 0),
                           jnp.logical_or(rows < th + 1, b < nb - 1))
    y1 = jnp.where(keep, y1, 0.0).astype(jnp.bfloat16)

    # in-kernel spatial padding: zero-edged VMEM slab (no HBM round trip)
    zcol = jnp.zeros((th + 2, 1, widp), jnp.bfloat16)
    slab_ref[:, 0:1, :] = zcol
    slab_ref[:, w + 1:w + 2, :] = zcol
    slab_ref[:, 1:w + 1, :] = y1

    # ---- conv2 3x3 (bn2 scale folded) + relu: 9 taps, only 3 column shifts -
    acc = None
    for kw in range(3):
        flat = slab_ref[:, kw:kw + w, :].reshape((th + 2) * w, widp)
        for kh in range(3):
            patch = flat[kh * w:(kh + th) * w]               # (th*w, widp)
            part = jnp.dot(patch, w2_ref[kh * 3 + kw],
                           preferred_element_type=jnp.float32)
            acc = part if acc is None else acc + part        # assign-on-first
    y2 = jnp.maximum(acc + b2_ref[...], 0.0).astype(jnp.bfloat16)

    # ---- conv3 (bn3 scale folded) + identity residual + relu ---------------
    y3 = jnp.dot(y2, w3_ref[...],
                 preferred_element_type=jnp.float32) + b3_ref[...]
    pre = y3 + mid.reshape(th * w, cinp).astype(jnp.float32)  # cinp == coutp
    out = jnp.maximum(pre, 0.0)

    o_ref[...] = out.reshape(th, w, coutp).astype(o_ref.dtype)
    if with_preact:
        pre_ref[...] = pre.reshape(th, w, coutp).astype(pre_ref.dtype)


# ---------------------------------------------------------------------------
# Bottleneck forward (NHWC core + NCHW-compatible wrapper)
# ---------------------------------------------------------------------------
def bottleneck_forward_nhwc(x_nhwc, params, *, is_last=False):
    """NHWC bottleneck forward.  Call this directly (instead of the NCHW
    wrapper) when the surrounding model is channels-last, to avoid the
    layout transposes."""
    n, h, w, cin = x_nhwc.shape
    cinp, widp = params["w1k"].shape
    coutp = params["w3k"].shape[-1]
    assert coutp == cinp, "identity residual requires inplanes == planes*4"
    cout = cin

    th = _pick_th(h, w)
    nb = h // th

    xp = x_nhwc
    if cinp != cin:  # lane-dense channel padding (zeros)
        xp = jnp.pad(x_nhwc, ((0, 0), (0, 0), (0, 0), (0, cinp - cin)))
    xb = xp.astype(jnp.bfloat16)

    out_sds = jax.ShapeDtypeStruct((n, h, w, coutp), jnp.float32)
    band_spec = lambda: pl.BlockSpec((None, th, w, coutp),
                                     lambda i, j: (i, j, 0, 0))
    if is_last:
        out_shape = (out_sds, out_sds)
        out_specs = (band_spec(), band_spec())
    else:
        out_shape = out_sds
        out_specs = band_spec()

    kernel = functools.partial(_bottleneck_kernel, h=h, w=w, th=th,
                               with_preact=is_last)

    res = pl.pallas_call(
        kernel,
        out_shape=out_shape,
        grid_spec=pltpu.PrefetchScalarGridSpec(
            num_scalar_prefetch=0,
            grid=(n, nb),
            in_specs=[
                # whole image, fetched once per image (index ignores band)
                pl.BlockSpec((None, h, w, cinp), lambda i, j: (i, 0, 0, 0)),
                _const_spec((cinp, widp), lambda i, j: (0, 0)),
                _const_spec((1, widp), lambda i, j: (0, 0)),
                _const_spec((9, widp, widp), lambda i, j: (0, 0, 0)),
                _const_spec((1, widp), lambda i, j: (0, 0)),
                _const_spec((widp, coutp), lambda i, j: (0, 0)),
                _const_spec((1, coutp), lambda i, j: (0, 0)),
            ],
            out_specs=out_specs,
            scratch_shapes=[pltpu.VMEM((th + 2, w + 2, widp), jnp.bfloat16)],
        ),
        compiler_params=pltpu.CompilerParams(
            dimension_semantics=("parallel", "parallel"),
            vmem_limit_bytes=_vmem_limit_bytes()),
    )(xb, params["w1k"], params["b1k"], params["w2k"], params["b2k"],
      params["w3k"], params["b3k"])

    if is_last:
        out, pre = res
        return out[..., :cout], pre[..., :cout]
    return res[..., :cout]


@functools.partial(jax.jit, static_argnames=("is_last",))
def bottleneck_forward(x_nchw, params, is_last=False):
    # PyTorch-compatible NCHW interface; compute is NHWC internally.
    x = jnp.transpose(x_nchw, (0, 2, 3, 1))
    res = bottleneck_forward_nhwc(x, params, is_last=is_last)
    if is_last:
        out, pre = res
        return (jnp.transpose(out, (0, 3, 1, 2)),
                jnp.transpose(pre, (0, 3, 1, 2)))
    return jnp.transpose(res, (0, 3, 1, 2))


# ---------------------------------------------------------------------------
# Pure-JAX reference (mirrors the PyTorch module in NCHW, f32)
# ---------------------------------------------------------------------------
def reference_forward(x, p):
    def conv(x, w, pad):
        return lax.conv_general_dilated(
            x, w, window_strides=(1, 1), padding=((pad, pad), (pad, pad)),
            dimension_numbers=("NCHW", "OIHW", "NCHW"))

    def bn(y, scale, shift):
        return y * scale[None, :, None, None] + shift[None, :, None, None]

    out = jax.nn.relu(bn(conv(x, p["w1_oihw"], 0), p["s1u"], p["b1u"]))
    out = jax.nn.relu(bn(conv(out, p["w2_oihw"], 1), p["s2u"], p["b2u"]))
    out = bn(conv(out, p["w3_oihw"], 0), p["s3u"], p["b3u"])
    preact = out + x
    return jax.nn.relu(preact), preact


# ---------------------------------------------------------------------------
# Deterministic parameter construction (kernel layout + reference copies)
# ---------------------------------------------------------------------------
def make_params(key, inplanes, planes, base_width=64, groups=1):
    assert groups == 1, "only groups=1 supported"
    width = int(planes * (base_width / 64.0)) * groups
    out_c = planes * 4  # expansion = 4
    assert inplanes == out_c, "identity residual requires inplanes == planes*4"

    keys = jax.random.split(key, 6)
    eps = 1e-5

    def bn_params(k, c):
        k1, k2, k3, k4 = jax.random.split(k, 4)
        gamma = 1.0 + 0.1 * jax.random.normal(k1, (c,), jnp.float32)
        beta = 0.1 * jax.random.normal(k2, (c,), jnp.float32)
        mean = 0.1 * jax.random.normal(k3, (c,), jnp.float32)
        var = jax.random.uniform(k4, (c,), jnp.float32, 0.5, 1.5)
        scale = gamma / jnp.sqrt(var + eps)
        shift = beta - mean * scale
        return scale, shift

    # PyTorch-layout weights (OIHW), no conv bias.
    w1_oihw = 0.2 * jax.random.normal(keys[0], (width, inplanes, 1, 1), jnp.float32)
    w2_oihw = 0.2 * jax.random.normal(keys[1], (width, width, 3, 3), jnp.float32)
    w3_oihw = 0.2 * jax.random.normal(keys[2], (out_c, width, 1, 1), jnp.float32)

    s1, b1 = bn_params(keys[3], width)
    s2, b2 = bn_params(keys[4], width)
    s3, b3 = bn_params(keys[5], out_c)

    cinp, widp, coutp = _round_up(inplanes), _round_up(width), _round_up(out_c)

    def pad2(m, r, c):
        return jnp.pad(m, ((0, r - m.shape[0]), (0, c - m.shape[1])))

    def padvec(v, c):
        return jnp.pad(v, (0, c - v.shape[0])).reshape(1, c).astype(jnp.float32)

    # Fold the BN scale into each conv weight (inference-form BN); only the
    # per-channel shift remains as an in-kernel add.
    w1k = pad2((w1_oihw[:, :, 0, 0] * s1[:, None]).T, cinp, widp).astype(jnp.bfloat16)
    w2s = w2_oihw * s2[:, None, None, None]
    w2t = jnp.transpose(w2s, (2, 3, 1, 0)).reshape(9, width, width)  # (tap, Cin, Cout)
    w2k = jnp.pad(w2t, ((0, 0), (0, widp - width), (0, widp - width))).astype(jnp.bfloat16)
    w3k = pad2((w3_oihw[:, :, 0, 0] * s3[:, None]).T, widp, coutp).astype(jnp.bfloat16)

    return dict(
        # kernel-ready (channel-padded, BN-scale folded, bf16)
        w1k=w1k, w2k=w2k, w3k=w3k,
        b1k=padvec(b1, widp), b2k=padvec(b2, widp), b3k=padvec(b3, coutp),
        # unpadded reference copies (PyTorch layout)
        w1_oihw=w1_oihw, w2_oihw=w2_oihw, w3_oihw=w3_oihw,
        s1u=s1, b1u=b1, s2u=s2, b2u=b2, s3u=s3, b3u=b3,
    )


if __name__ == "__main__":
    key = jax.random.PRNGKey(0)
    k_x, k_p = jax.random.split(key)

    # Small shapes consistent with the module: Bottleneck(inplanes=16, planes=4)
    N, planes = 2, 4
    inplanes = planes * 4          # identity residual (no downsample)
    H = W = 16
    x = jax.random.normal(k_x, (N, inplanes, H, W), jnp.float32)

    params = make_params(k_p, inplanes, planes)

    out = jax.block_until_ready(bottleneck_forward(x, params, is_last=False))
    out_l, pre_l = jax.block_until_ready(bottleneck_forward(x, params, is_last=True))

    ref_out, ref_pre = jax.block_until_ready(reference_forward(x, params))

    assert out.shape == ref_out.shape == (N, inplanes, H, W)
    err = float(jnp.max(jnp.abs(out - ref_out)))
    err_pre = float(jnp.max(jnp.abs(pre_l - ref_pre)))
    # bf16 MXU path (scale-folded weights) -> loosened tolerance vs f32 ref
    assert jnp.allclose(out, ref_out, rtol=5e-2, atol=1e-1), (
        f"out mismatch vs reference: max abs err {err}")
    assert jnp.allclose(out_l, ref_out, rtol=5e-2, atol=1e-1), (
        "is_last=True out mismatch vs reference")
    assert jnp.allclose(pre_l, ref_pre, rtol=5e-2, atol=1e-1), (
        f"preact mismatch vs reference: max abs err {err_pre}")

    print("KERNEL_OK")
</pallas_src>

<mosaic_0001>
module attributes {stable_mosaic.version = 11 : i64} {
  func.func @_bottleneck_kernel(%arg0: i32, %arg1: i32, %arg2: memref<1x16x16x128xbf16, #tpu.memory_space<vmem>>, %arg3: memref<128x128xbf16, #tpu.memory_space<vmem>>, %arg4: memref<1x128xf32, #tpu.memory_space<vmem>>, %arg5: memref<9x128x128xbf16, #tpu.memory_space<vmem>>, %arg6: memref<1x128xf32, #tpu.memory_space<vmem>>, %arg7: memref<128x128xbf16, #tpu.memory_space<vmem>>, %arg8: memref<1x128xf32, #tpu.memory_space<vmem>>, %arg9: memref<1x8x16x128xf32, #tpu.memory_space<vmem>>, %arg10: memref<10x18x128xbf16, #tpu.memory_space<vmem>>) attributes {dimension_semantics = [#tpu.dimension_semantics<parallel>, #tpu.dimension_semantics<parallel>], iteration_bounds = array<i64: 2, 2>, scalar_prefetch = 0 : i64, scratch_operands = 1 : i64, tpu.core_type = #tpu.core_type<tc>, window_params = [{transform_indices = @transform_0, window_bounds = array<i64: 1, 16, 16, 128>}, {pipeline_mode = #tpu.pipeline_mode<synchronous>, transform_indices = @transform_1, window_bounds = array<i64: 128, 128>}, {pipeline_mode = #tpu.pipeline_mode<synchronous>, transform_indices = @transform_2, window_bounds = array<i64: 1, 128>}, {pipeline_mode = #tpu.pipeline_mode<synchronous>, transform_indices = @transform_3, window_bounds = array<i64: 9, 128, 128>}, {pipeline_mode = #tpu.pipeline_mode<synchronous>, transform_indices = @transform_4, window_bounds = array<i64: 1, 128>}, {pipeline_mode = #tpu.pipeline_mode<synchronous>, transform_indices = @transform_5, window_bounds = array<i64: 128, 128>}, {pipeline_mode = #tpu.pipeline_mode<synchronous>, transform_indices = @transform_6, window_bounds = array<i64: 1, 128>}, {transform_indices = @transform_7, window_bounds = array<i64: 1, 8, 16, 128>}]} {
    %c8_i32 = arith.constant 8 : i32
    %0 = arith.muli %arg1, %c8_i32 : i32
    %c1_i32 = arith.constant 1 : i32
    %1 = arith.subi %0, %c1_i32 : i32
    %c0_i32 = arith.constant 0 : i32
    %2 = arith.maxsi %1, %c0_i32 : i32
    %c8_i32_0 = arith.constant 8 : i32
    %3 = arith.addi %0, %c8_i32_0 : i32
    %c15_i32 = arith.constant 15 : i32
    %4 = arith.minsi %3, %c15_i32 : i32
    %c0 = arith.constant 0 : index
    %5 = arith.index_cast %2 : i32 to index
    %c0_1 = arith.constant 0 : index
    %c0_2 = arith.constant 0 : index
    %6 = vector.load %arg2[%c0, %5, %c0_1, %c0_2] : memref<1x16x16x128xbf16, #tpu.memory_space<vmem>>, vector<1x1x16x128xbf16>
    %7 = vector.shape_cast %6 : vector<1x1x16x128xbf16> to vector<1x16x128xbf16>
    %c0_3 = arith.constant 0 : index
    %8 = arith.index_cast %0 : i32 to index
    %c0_4 = arith.constant 0 : index
    %c0_5 = arith.constant 0 : index
    %9 = vector.load %arg2[%c0_3, %8, %c0_4, %c0_5] : memref<1x16x16x128xbf16, #tpu.memory_space<vmem>>, vector<1x8x16x128xbf16>
    %10 = vector.shape_cast %9 : vector<1x8x16x128xbf16> to vector<8x16x128xbf16>
    %c0_6 = arith.constant 0 : index
    %11 = arith.index_cast %4 : i32 to index
    %c0_7 = arith.constant 0 : index
    %c0_8 = arith.constant 0 : index
    %12 = vector.load %arg2[%c0_6, %11, %c0_7, %c0_8] : memref<1x16x16x128xbf16, #tpu.memory_space<vmem>>, vector<1x1x16x128xbf16>
    %13 = vector.shape_cast %12 : vector<1x1x16x128xbf16> to vector<1x16x128xbf16>
    %14 = tpu.concatenate %7, %10, %13 in 0 : vector<1x16x128xbf16>, vector<8x16x128xbf16>, vector<1x16x128xbf16> -> vector<10x16x128xbf16>
    %15 = vector.shape_cast %14 : vector<10x16x128xbf16> to vector<160x128xbf16>
    %c0_9 = arith.constant 0 : index
    %c0_10 = arith.constant 0 : index
    %16 = vector.load %arg3[%c0_9, %c0_10] : memref<128x128xbf16, #tpu.memory_space<vmem>>, vector<128x128xbf16>
    %cst = arith.constant dense<0.000000e+00> : vector<160x128xf32>
    %17 = tpu.matmul %15, %16, %cst {dimension_numbers = #tpu.dot_dimension_numbers<[1], [0], [0], [1], [0, 0, 1, 1], [], []>} : vector<160x128xbf16>, vector<128x128xbf16>, vector<160x128xf32> -> vector<160x128xf32>
    %c0_11 = arith.constant 0 : index
    %c0_12 = arith.constant 0 : index
    %18 = vector.load %arg4[%c0_11, %c0_12] : memref<1x128xf32, #tpu.memory_space<vmem>>, vector<1x128xf32>
    %19 = vector.broadcast %18 : vector<1x128xf32> to vector<160x128xf32>
    %20 = arith.addf %17, %19 : vector<160x128xf32>
    %cst_13 = arith.constant 0.000000e+00 : f32
    %21 = vector.broadcast %cst_13 : f32 to vector<160x128xf32>
    %22 = arith.maximumf %20, %21 : vector<160x128xf32>
    %23 = vector.shape_cast %22 : vector<160x128xf32> to vector<10x16x128xf32>
    %24 = tpu.iota {dimensions = array<i32: 0>} : vector<10x1x1xi32>
    %c0_i32_14 = arith.constant 0 : i32
    %25 = vector.broadcast %c0_i32_14 : i32 to vector<10x1x1xi32>
    %26 = arith.cmpi sgt, %24, %25 : vector<10x1x1xi32>
    %c0_i32_15 = arith.constant 0 : i32
    %27 = arith.cmpi sgt, %arg1, %c0_i32_15 : i32
    %28 = vector.broadcast %27 : i1 to vector<10x1x1xi1>
    %29 = arith.ori %26, %28 : vector<10x1x1xi1>
    %c9_i32 = arith.constant 9 : i32
    %30 = vector.broadcast %c9_i32 : i32 to vector<10x1x1xi32>
    %31 = arith.cmpi slt, %24, %30 : vector<10x1x1xi32>
    %c1_i32_16 = arith.constant 1 : i32
    %32 = arith.cmpi slt, %arg1, %c1_i32_16 : i32
    %33 = vector.broadcast %32 : i1 to vector<10x1x1xi1>
    %34 = arith.ori %31, %33 : vector<10x1x1xi1>
    %35 = arith.andi %29, %34 : vector<10x1x1xi1>
    %cst_17 = arith.constant 0.000000e+00 : f32
    %36 = vector.shape_cast %35 : vector<10x1x1xi1> to vector<10x1x1xi1>
    %37 = vector.broadcast %36 : vector<10x1x1xi1> to vector<10x16x128xi1>
    %38 = vector.broadcast %cst_17 : f32 to vector<10x16x128xf32>
    %39 = arith.select %37, %23, %38 : vector<10x16x128xi1>, vector<10x16x128xf32>
    %40 = arith.truncf %39 : vector<10x16x128xf32> to vector<10x16x128xbf16>
    %cst_18 = arith.constant 0.000000e+00 : bf16
    %41 = vector.broadcast %cst_18 : bf16 to vector<10x1x128xbf16>
    %c0_19 = arith.constant 0 : index
    %c0_20 = arith.constant 0 : index
    %c0_21 = arith.constant 0 : index
    %42 = vector.load %arg10[%c0_19, %c0_20, %c0_21] : memref<10x18x128xbf16, #tpu.memory_space<vmem>>, vector<10x1x128xbf16>
    tpu.vector_store %arg10[%c0_19, %c0_20, %c0_21], %41 {strides = array<i32>} : memref<10x18x128xbf16, #tpu.memory_space<vmem>>, vector<10x1x128xbf16>,
    %c0_22 = arith.constant 0 : index
    %c17 = arith.constant 17 : index
    %c0_23 = arith.constant 0 : index
    %43 = vector.load %arg10[%c0_22, %c17, %c0_23] : memref<10x18x128xbf16, #tpu.memory_space<vmem>>, vector<10x1x128xbf16>
    tpu.vector_store %arg10[%c0_22, %c17, %c0_23], %41 {strides = array<i32>} : memref<10x18x128xbf16, #tpu.memory_space<vmem>>, vector<10x1x128xbf16>,
    %c0_24 = arith.constant 0 : index
    %c1 = arith.constant 1 : index
    %c0_25 = arith.constant 0 : index
    %44 = vector.load %arg10[%c0_24, %c1, %c0_25] : memref<10x18x128xbf16, #tpu.memory_space<vmem>>, vector<10x16x128xbf16>
    tpu.vector_store %arg10[%c0_24, %c1, %c0_25], %40 {strides = array<i32>} : memref<10x18x128xbf16, #tpu.memory_space<vmem>>, vector<10x16x128xbf16>,
    %c0_26 = arith.constant 0 : index
    %c0_27 = arith.constant 0 : index
    %c0_28 = arith.constant 0 : index
    %45 = vector.load %arg10[%c0_26, %c0_27, %c0_28] : memref<10x18x128xbf16, #tpu.memory_space<vmem>>, vector<10x16x128xbf16>
    %46 = vector.shape_cast %45 : vector<10x16x128xbf16> to vector<160x128xbf16>
    %47 = vector.extract_strided_slice %46 {offsets = [0, 0], sizes = [128, 128], strides = [1, 1]} : vector<160x128xbf16> to vector<128x128xbf16>
    %c0_29 = arith.constant 0 : index
    %c0_30 = arith.constant 0 : index
    %c0_31 = arith.constant 0 : index
    %48 = vector.load %arg5[%c0_29, %c0_30, %c0_31] : memref<9x128x128xbf16, #tpu.memory_space<vmem>>, vector<1x128x128xbf16>
    %49 = vector.shape_cast %48 : vector<1x128x128xbf16> to vector<128x128xbf16>
    %cst_32 = arith.constant dense<0.000000e+00> : vector<128x128xf32>
    %50 = tpu.matmul %47, %49, %cst_32 {dimension_numbers = #tpu.dot_dimension_numbers<[1], [0], [0], [1], [0, 0, 1, 1], [], []>} : vector<128x128xbf16>, vector<128x128xbf16>, vector<128x128xf32> -> vector<128x128xf32>
    %51 = vector.extract_strided_slice %46 {offsets = [16, 0], sizes = [128, 128], strides = [1, 1]} : vector<160x128xbf16> to vector<128x128xbf16>
    %c3 = arith.constant 3 : index
    %c0_33 = arith.constant 0 : index
    %c0_34 = arith.constant 0 : index
    %52 = vector.load %arg5[%c3, %c0_33, %c0_34] : memref<9x128x128xbf16, #tpu.memory_space<vmem>>, vector<1x128x128xbf16>
    %53 = vector.shape_cast %52 : vector<1x128x128xbf16> to vector<128x128xbf16>
    %cst_35 = arith.constant dense<0.000000e+00> : vector<128x128xf32>
    %54 = tpu.matmul %51, %53, %cst_35 {dimension_numbers = #tpu.dot_dimension_numbers<[1], [0], [0], [1], [0, 0, 1, 1], [], []>} : vector<128x128xbf16>, vector<128x128xbf16>, vector<128x128xf32> -> vector<128x128xf32>
    %55 = arith.addf %50, %54 : vector<128x128xf32>
    %56 = vector.extract_strided_slice %46 {offsets = [32, 0], sizes = [128, 128], strides = [1, 1]} : vector<160x128xbf16> to vector<128x128xbf16>
    %c6 = arith.constant 6 : index
    %c0_36 = arith.constant 0 : index
    %c0_37 = arith.constant 0 : index
    %57 = vector.load %arg5[%c6, %c0_36, %c0_37] : memref<9x128x128xbf16, #tpu.memory_space<vmem>>, vector<1x128x128xbf16>
    %58 = vector.shape_cast %57 : vector<1x128x128xbf16> to vector<128x128xbf16>
    %cst_38 = arith.constant dense<0.000000e+00> : vector<128x128xf32>
    %59 = tpu.matmul %56, %58, %cst_38 {dimension_numbers = #tpu.dot_dimension_numbers<[1], [0], [0], [1], [0, 0, 1, 1], [], []>} : vector<128x128xbf16>, vector<128x128xbf16>, vector<128x128xf32> -> vector<128x128xf32>
    %60 = arith.addf %55, %59 : vector<128x128xf32>
    %c0_39 = arith.constant 0 : index
    %c1_40 = arith.constant 1 : index
    %c0_41 = arith.constant 0 : index
    %61 = vector.load %arg10[%c0_39, %c1_40, %c0_41] : memref<10x18x128xbf16, #tpu.memory_space<vmem>>, vector<10x16x128xbf16>
    %62 = vector.shape_cast %61 : vector<10x16x128xbf16> to vector<160x128xbf16>
    %63 = vector.extract_strided_slice %62 {offsets = [0, 0], sizes = [128, 128], strides = [1, 1]} : vector<160x128xbf16> to vector<128x128xbf16>
    %c1_42 = arith.constant 1 : index
    %c0_43 = arith.constant 0 : index
    %c0_44 = arith.constant 0 : index
    %64 = vector.load %arg5[%c1_42, %c0_43, %c0_44] : memref<9x128x128xbf16, #tpu.memory_space<vmem>>, vector<1x128x128xbf16>
    %65 = vector.shape_cast %64 : vector<1x128x128xbf16> to vector<128x128xbf16>
    %cst_45 = arith.constant dense<0.000000e+00> : vector<128x128xf32>
    %66 = tpu.matmul %63, %65, %cst_45 {dimension_numbers = #tpu.dot_dimension_numbers<[1], [0], [0], [1], [0, 0, 1, 1], [], []>} : vector<128x128xbf16>, vector<128x128xbf16>, vector<128x128xf32> -> vector<128x128xf32>
    %67 = arith.addf %60, %66 : vector<128x128xf32>
    %68 = vector.extract_strided_slice %62 {offsets = [16, 0], sizes = [128, 128], strides = [1, 1]} : vector<160x128xbf16> to vector<128x128xbf16>
    %c4 = arith.constant 4 : index
    %c0_46 = arith.constant 0 : index
    %c0_47 = arith.constant 0 : index
    %69 = vector.load %arg5[%c4, %c0_46, %c0_47] : memref<9x128x128xbf16, #tpu.memory_space<vmem>>, vector<1x128x128xbf16>
    %70 = vector.shape_cast %69 : vector<1x128x128xbf16> to vector<128x128xbf16>
    %cst_48 = arith.constant dense<0.000000e+00> : vector<128x128xf32>
    %71 = tpu.matmul %68, %70, %cst_48 {dimension_numbers = #tpu.dot_dimension_numbers<[1], [0], [0], [1], [0, 0, 1, 1], [], []>} : vector<128x128xbf16>, vector<128x128xbf16>, vector<128x128xf32> -> vector<128x128xf32>
    %72 = arith.addf %67, %71 : vector<128x128xf32>
    %73 = vector.extract_strided_slice %62 {offsets = [32, 0], sizes = [128, 128], strides = [1, 1]} : vector<160x128xbf16> to vector<128x128xbf16>
    %c7 = arith.constant 7 : index
    %c0_49 = arith.constant 0 : index
    %c0_50 = arith.constant 0 : index
    %74 = vector.load %arg5[%c7, %c0_49, %c0_50] : memref<9x128x128xbf16, #tpu.memory_space<vmem>>, vector<1x128x128xbf16>
    %75 = vector.shape_cast %74 : vector<1x128x128xbf16> to vector<128x128xbf16>
    %cst_51 = arith.constant dense<0.000000e+00> : vector<128x128xf32>
    %76 = tpu.matmul %73, %75, %cst_51 {dimension_numbers = #tpu.dot_dimension_numbers<[1], [0], [0], [1], [0, 0, 1, 1], [], []>} : vector<128x128xbf16>, vector<128x128xbf16>, vector<128x128xf32> -> vector<128x128xf32>
    %77 = arith.addf %72, %76 : vector<128x128xf32>
    %c0_52 = arith.constant 0 : index
    %c2 = arith.constant 2 : index
    %c0_53 = arith.constant 0 : index
    %78 = vector.load %arg10[%c0_52, %c2, %c0_53] : memref<10x18x128xbf16, #tpu.memory_space<vmem>>, vector<10x16x128xbf16>
    %79 = vector.shape_cast %78 : vector<10x16x128xbf16> to vector<160x128xbf16>
    %80 = vector.extract_strided_slice %79 {offsets = [0, 0], sizes = [128, 128], strides = [1, 1]} : vector<160x128xbf16> to vector<128x128xbf16>
    %c2_54 = arith.constant 2 : index
    %c0_55 = arith.constant 0 : index
    %c0_56 = arith.constant 0 : index
    %81 = vector.load %arg5[%c2_54, %c0_55, %c0_56] : memref<9x128x128xbf16, #tpu.memory_space<vmem>>, vector<1x128x128xbf16>
    %82 = vector.shape_cast %81 : vector<1x128x128xbf16> to vector<128x128xbf16>
    %cst_57 = arith.constant dense<0.000000e+00> : vector<128x128xf32>
    %83 = tpu.matmul %80, %82, %cst_57 {dimension_numbers = #tpu.dot_dimension_numbers<[1], [0], [0], [1], [0, 0, 1, 1], [], []>} : vector<128x128xbf16>, vector<128x128xbf16>, vector<128x128xf32> -> vector<128x128xf32>
    %84 = arith.addf %77, %83 : vector<128x128xf32>
    %85 = vector.extract_strided_slice %79 {offsets = [16, 0], sizes = [128, 128], strides = [1, 1]} : vector<160x128xbf16> to vector<128x128xbf16>
    %c5 = arith.constant 5 : index
    %c0_58 = arith.constant 0 : index
    %c0_59 = arith.constant 0 : index
    %86 = vector.load %arg5[%c5, %c0_58, %c0_59] : memref<9x128x128xbf16, #tpu.memory_space<vmem>>, vector<1x128x128xbf16>
    %87 = vector.shape_cast %86 : vector<1x128x128xbf16> to vector<128x128xbf16>
    %cst_60 = arith.constant dense<0.000000e+00> : vector<128x128xf32>
    %88 = tpu.matmul %85, %87, %cst_60 {dimension_numbers = #tpu.dot_dimension_numbers<[1], [0], [0], [1], [0, 0, 1, 1], [], []>} : vector<128x128xbf16>, vector<128x128xbf16>, vector<128x128xf32> -> vector<128x128xf32>
    %89 = arith.addf %84, %88 : vector<128x128xf32>
    %90 = vector.extract_strided_slice %79 {offsets = [32, 0], sizes = [128, 128], strides = [1, 1]} : vector<160x128xbf16> to vector<128x128xbf16>
    %c8 = arith.constant 8 : index
    %c0_61 = arith.constant 0 : index
    %c0_62 = arith.constant 0 : index
    %91 = vector.load %arg5[%c8, %c0_61, %c0_62] : memref<9x128x128xbf16, #tpu.memory_space<vmem>>, vector<1x128x128xbf16>
    %92 = vector.shape_cast %91 : vector<1x128x128xbf16> to vector<128x128xbf16>
    %cst_63 = arith.constant dense<0.000000e+00> : vector<128x128xf32>
    %93 = tpu.matmul %90, %92, %cst_63 {dimension_numbers = #tpu.dot_dimension_numbers<[1], [0], [0], [1], [0, 0, 1, 1], [], []>} : vector<128x128xbf16>, vector<128x128xbf16>, vector<128x128xf32> -> vector<128x128xf32>
    %94 = arith.addf %89, %93 : vector<128x128xf32>
    %c0_64 = arith.constant 0 : index
    %c0_65 = arith.constant 0 : index
    %95 = vector.load %arg6[%c0_64, %c0_65] : memref<1x128xf32, #tpu.memory_space<vmem>>, vector<1x128xf32>
    %96 = vector.broadcast %95 : vector<1x128xf32> to vector<128x128xf32>
    %97 = arith.addf %94, %96 : vector<128x128xf32>
    %cst_66 = arith.constant 0.000000e+00 : f32
    %98 = vector.broadcast %cst_66 : f32 to vector<128x128xf32>
    %99 = arith.maximumf %97, %98 : vector<128x128xf32>
    %100 = arith.truncf %99 : vector<128x128xf32> to vector<128x128xbf16>
    %c0_67 = arith.constant 0 : index
    %c0_68 = arith.constant 0 : index
    %101 = vector.load %arg7[%c0_67, %c0_68] : memref<128x128xbf16, #tpu.memory_space<vmem>>, vector<128x128xbf16>
    %cst_69 = arith.constant dense<0.000000e+00> : vector<128x128xf32>
    %102 = tpu.matmul %100, %101, %cst_69 {dimension_numbers = #tpu.dot_dimension_numbers<[1], [0], [0], [1], [0, 0, 1, 1], [], []>} : vector<128x128xbf16>, vector<128x128xbf16>, vector<128x128xf32> -> vector<128x128xf32>
    %c0_70 = arith.constant 0 : index
    %c0_71 = arith.constant 0 : index
    %103 = vector.load %arg8[%c0_70, %c0_71] : memref<1x128xf32, #tpu.memory_space<vmem>>, vector<1x128xf32>
    %104 = vector.broadcast %103 : vector<1x128xf32> to vector<128x128xf32>
    %105 = arith.addf %102, %104 : vector<128x128xf32>
    %106 = vector.shape_cast %10 : vector<8x16x128xbf16> to vector<128x128xbf16>
    %107 = arith.extf %106 : vector<128x128xbf16> to vector<128x128xf32>
    %108 = arith.addf %105, %107 : vector<128x128xf32>
    %cst_72 = arith.constant 0.000000e+00 : f32
    %109 = vector.broadcast %cst_72 : f32 to vector<128x128xf32>
    %110 = arith.maximumf %108, %109 : vector<128x128xf32>
    %111 = vector.shape_cast %110 : vector<128x128xf32> to vector<8x16x128xf32>
    %c0_73 = arith.constant 0 : index
    %c0_74 = arith.constant 0 : index
    %c0_75 = arith.constant 0 : index
    %c0_76 = arith.constant 0 : index
    %112 = vector.load %arg9[%c0_73, %c0_74, %c0_75, %c0_76] : memref<1x8x16x128xf32, #tpu.memory_space<vmem>>, vector<1x8x16x128xf32>
    %113 = vector.shape_cast %112 : vector<1x8x16x128xf32> to vector<8x16x128xf32>
    %114 = vector.shape_cast %111 : vector<8x16x128xf32> to vector<1x8x16x128xf32>
    tpu.vector_store %arg9[%c0_73, %c0_74, %c0_75, %c0_76], %114 {strides = array<i32>} : memref<1x8x16x128xf32, #tpu.memory_space<vmem>>, vector<1x8x16x128xf32>,
    return
  }
  func.func @transform_0(%arg0: i32, %arg1: i32) -> (i32, i32, i32, i32) {
    %c0_i32 = arith.constant 0 : i32
    %c0_i32_0 = arith.constant 0 : i32
    %c0_i32_1 = arith.constant 0 : i32
    %c0_i32_2 = arith.constant 0 : i32
    return %arg0, %c0_i32, %c0_i32_0, %c0_i32_1 : i32, i32, i32, i32
  }
  func.func @transform_1(%arg0: i32, %arg1: i32) -> (i32, i32) {
    %c0_i32 = arith.constant 0 : i32
    %c0_i32_0 = arith.constant 0 : i32
    %c0_i32_1 = arith.constant 0 : i32
    return %c0_i32, %c0_i32_0 : i32, i32
  }
  func.func @transform_2(%arg0: i32, %arg1: i32) -> (i32, i32) {
    %c0_i32 = arith.constant 0 : i32
    %c0_i32_0 = arith.constant 0 : i32
    %c0_i32_1 = arith.constant 0 : i32
    return %c0_i32, %c0_i32_0 : i32, i32
  }
  func.func @transform_3(%arg0: i32, %arg1: i32) -> (i32, i32, i32) {
    %c0_i32 = arith.constant 0 : i32
    %c0_i32_0 = arith.constant 0 : i32
    %c0_i32_1 = arith.constant 0 : i32
    %c0_i32_2 = arith.constant 0 : i32
    return %c0_i32, %c0_i32_0, %c0_i32_1 : i32, i32, i32
  }
  func.func @transform_4(%arg0: i32, %arg1: i32) -> (i32, i32) {
    %c0_i32 = arith.constant 0 : i32
    %c0_i32_0 = arith.constant 0 : i32
    %c0_i32_1 = arith.constant 0 : i32
    return %c0_i32, %c0_i32_0 : i32, i32
  }
  func.func @transform_5(%arg0: i32, %arg1: i32) -> (i32, i32) {
    %c0_i32 = arith.constant 0 : i32
    %c0_i32_0 = arith.constant 0 : i32
    %c0_i32_1 = arith.constant 0 : i32
    return %c0_i32, %c0_i32_0 : i32, i32
  }
  func.func @transform_6(%arg0: i32, %arg1: i32) -> (i32, i32) {
    %c0_i32 = arith.constant 0 : i32
    %c0_i32_0 = arith.constant 0 : i32
    %c0_i32_1 = arith.constant 0 : i32
    return %c0_i32, %c0_i32_0 : i32, i32
  }
  func.func @transform_7(%arg0: i32, %arg1: i32) -> (i32, i32, i32, i32) {
    %c0_i32 = arith.constant 0 : i32
    %c0_i32_0 = arith.constant 0 : i32
    %c0_i32_1 = arith.constant 0 : i32
    return %arg0, %arg1, %c0_i32, %c0_i32_0 : i32, i32, i32, i32
  }
}

</mosaic_0001>

<bundles_post_ra>
// kernel: bottleneck_forward.1
= control target key start
LH: loop header
LB: loop body
LE: loop exit
PB: predicated region body
PF: predicated region fallthrough
CT: control target
= control target key end

     0   :  { %s4655_s24 = smov 0   ;;  %s4657_s25 = smov 0   ;;  %s5824_s0 = inlined_call_operand.vmem [shape: bf16[2,16,16,128], index: 0, kind: input, shape index: {}]   ;;  %s5825_s1 = inlined_call_operand.vmem [shape: bf16[128,128], index: 1, kind: input, shape index: {}]   ;;  %s5826_s2 = inlined_call_operand.vmem [shape: f32[1,128], index: 2, kind: input, shape index: {}]   ;;  %s5827_s3 = inlined_call_operand.vmem [shape: bf16[9,128,128], index: 3, kind: input, shape index: {}]   ;;  %s5828_s4 = inlined_call_operand.vmem [shape: f32[1,128], index: 4, kind: input, shape index: {}]   ;;  %s5829_s5 = inlined_call_operand.vmem [shape: bf16[128,128], index: 5, kind: input, shape index: {}]   ;;  %s5830_s6 = inlined_call_operand.vmem [shape: f32[1,128], index: 6, kind: input, shape index: {}]   ;;  %s5831_s7 = inlined_call_operand.vmem [shape: f32[2,16,16,128], index: 7, kind: output, shape index: {}]  }
   0x1   :  { %s4659_s26 = smov 0   ;;  %s4661_s27 = smov 0  }
   0x2   :  { %s4663_s28 = smov 0  }
   0x3 LB: > { %s26_s29 = sadd.s32 1, %s4605_s26  ;;  %s29_s30 = sadd.s32 1, %s4609_s27  ;;  %s4613_s28 = sphi %s4663_s28, %s17_s28   ;;  %s4609_s27 = sphi %s4661_s27, %s5897_s27   ;;  %s4605_s26 = sphi %s4659_s26, %s5896_s26   ;;  %s4601_s25 = sphi %s4657_s25, %s5895_s25   ;;  %s4597_s24 = sphi %s4655_s24, %s5894_s24  }
   0x4   : > { %p27_p0 = scmp.ge.s32.totalorder %s26_s29, 2  ;;  %p3530_p1 = scmp.ge.s32.totalorder %s4613_s28, 1 }
   0x5   : > { %p251_p2 = scmp.lt.s32.totalorder %s4613_s28, 5 }
   0x6   : > { %s5899_s29 = smov (%p27_p0, %s26_s29), 0  ;;  %s5901_s30 = smov (!%p27_p0, %s29_s30), %s4609_s27 }
   0x7   : > { %p252_p3 = pnand %p3530_p1, %p251_p2  ;;  %p31_p4 = scmp.ge.s32.totalorder %s5901_s30, 2 }
   0x9   : > { %s5903_s30 = smov (%p31_p4, %s5901_s30), 0  ;;  %255 = sbr.rel (%p252_p3) target bundleno = 851 (0x353), region = 48 }
   0xe   : > { %v4451_v0 = vld [vmem:[%s5825_s1 + $0x38] sm:$0xff]   ;;  %p288_p5 = scmp.lt.s32.totalorder %s4601_s25, 1  ;;  %v4452_v1 = vld [vmem:[%s5825_s1 + $0x30] sm:$0xff]   ;;  %s4694_s12 = sshll.u32 %s4597_s24, 3  ;;  %v4453_v2 = vld [vmem:[%s5825_s1 + $0x28] sm:$0xff]   ;;  %vm647_vm0 = vcmask 1040384  }
   0xf   : > { %4039 = vmatprep.subr.bf16.mxu0 %v4451_v0  ;;  %p296_p6 = scmp.lt.s32.totalorder %s4694_s12, 15  ;;  %v4454_v3 = vld [vmem:[%s5825_s1 + $0x20] sm:$0xff]   ;;  %s3538_s20 = sadd.s32 4294967295, %s4694_s12  ;;  %v4455_v4 = vld [vmem:[%s5825_s1 + $0x18] sm:$0xff]   ;;  %v4456_v5 = vld [vmem:[%s5825_s1 + $0x10] sm:$0xff]   ;;  %vm964_vm6 = vcmask 1043456  }
  0x10   : > { %s5905_s25 = smov (!%p288_p5, %s4601_s25), 1  ;;  %4040 = vmatpush3.bf16.msra.mxu0 %v4451_v0  ;;  %p307_p7 = scmp.gt.s32.totalorder %s3538_s20, 0  ;;  %v4457_v7 = vld [vmem:[%s5825_s1 + $0x8] sm:$0xff]   ;;  %v4458_v8 = vld [vmem:[%s5825_s1] sm:$0xff]   ;;  %vm648_vm1 = vsmask.f32 256 }
  0x11   : > { %4041 = vmatprep.subr.bf16.mxu0 %v4452_v1  ;;  %s3535_s15 = sshll.u32 %s5905_s25, 5  ;;  %s3836_s19 = sshll.u32 %s5905_s25, 7  ;;  %vm4735_vm2 = vmand %vm647_vm0, %vm648_vm1  ;;  %v653_v19 = vld [vmem:[#allocation2 + $0xc] sm:$0x1]  ;;  %vm680_vm3 = vsmask.f32 7938 }
  0x12   : > { %s297_s18 = scalar_select %p296_p6, %s4694_s12, 15  ;;  %v654_v20 = vsel %vm4735_vm2, 0, %v653_v19  ;;  %v4469_v21 = vld [vmem:[%s5827_s3 + $0xf8] sm:$0xff]   ;;  %vm4745_vm4 = vmand %vm647_vm0, %vm680_vm3  ;;  %v650_v24 = vld [vmem:[#allocation2] sm:$0x1]  ;;  %vm2504_vm14 = vcmask 1042432  }
  0x13   : > { %s292_s9 = scalar_lea.vmem %s5824_s0, %s3836_s19  ;;  %s309_s10 = sadd.s32 8, %s4694_s12  ;;  %655 = vst [vmem:[#allocation2 + $0xc] sm:$0x1] %v654_v20  ;;  %v4470_v23 = vld [vmem:[%s5827_s3 + $0x1b8] sm:$0xff]   ;;  %4075 = vmatprep.subr.bf16.mxu1 %v4469_v21  ;;  %v651_v25 = vsel %vm4735_vm2, 0, %v650_v24  ;;  %v4471_v28 = vld [vmem:[%s5827_s3 + $0xf0] sm:$0xff]   ;;  %vm4865_vm8 = vmand %vm964_vm6, %vm680_vm3 }
  0x14   : > { %4042 = vmatpush3.bf16.msra.mxu0 %v4452_v1  ;;  %s3534_s21 = sshll.u32 %s297_s18, 1  ;;  %s5907_s20 = smov (!%p307_p7, %s3538_s20), 0  ;;  %v685_v26 = vld [vmem:[#allocation2 + $0x14] sm:$0x1]  ;;  %4076 = vmatpush3.bf16.msra.mxu1 %v4469_v21  ;;  %652 = vst [vmem:[#allocation2] sm:$0x1] %v651_v25 }
  0x15   : > { %4043 = vmatprep.subr.bf16.mxu0 %v4453_v2  ;;  %s4705_s22 = sadd.s32 %s3535_s15, %s3534_s21  ;;  %p310_p8 = scmp.lt.s32.totalorder %s309_s10, 15  ;;  %v686_v27 = vsel %vm4745_vm4, 0, %v685_v26  ;;  %v4472_v29 = vld [vmem:[%s5827_s3 + $0x1b0] sm:$0xff]   ;;  %4077 = vmatprep.subr.bf16.mxu1 %v4471_v28  ;;  %v682_v30 = vld [vmem:[#allocation2 + $0x8] sm:$0x1]  ;;  %v4475_v40 = vld [vmem:[%s5827_s3 + $0xe0] sm:$0xff]  }
  0x16   : > { %s3837_s16 = sshll.u32 %s5907_s20, 3  ;;  %s3839_s17 = sshll.u32 %s4597_s24, 6  ;;  %687 = vst [vmem:[#allocation2 + $0x14] sm:$0x1] %v686_v27  ;;  %v683_v31 = vsel %vm4745_vm4, 0, %v682_v30  ;;  %v4473_v34 = vld [vmem:[%s5827_s3 + $0xe8] sm:$0xff]  }
  0x17   : > { %s314_s15 = scalar_lea.vmem %s292_s9, %s3837_s16  ;;  %s5909_s10 = smov (!%p310_p8, %s309_s10), 15  ;;  %v659_v32 = vld [vmem:[#allocation2 + $0x24] sm:$0x1]  ;;  %684 = vst [vmem:[#allocation2 + $0x8] sm:$0x1] %v683_v31  ;;  %v4474_v37 = vld [vmem:[%s5827_s3 + $0x1a8] sm:$0xff]  }
  0x18   : > { %4044 = vmatpush3.bf16.msra.mxu0 %v4453_v2  ;;  %v4459_v6 = vld [vmem:[%s314_s15] sm:$0xff]   ;;  %s3840_s12 = sshll.u32 %s5909_s10, 3  ;;  %s4724_s20 = scalar_lea.vmem %s292_s9, %s3839_s17  ;;  %4078 = vmatpush3.bf16.msra.mxu1 %v4471_v28  ;;  %v660_v33 = vsel %vm4735_vm2, 0, %v659_v32  ;;  %v656_v35 = vld [vmem:[#allocation2 + $0x18] sm:$0x1]  ;;  %v4479_v51 = vld [vmem:[%s5827_s3 + $0xd0] sm:$0xff]  }
  0x19   : > { %4045 = vmatprep.subr.bf16.mxu0 %v4454_v3  ;;  %4055 = vmatprep.mubr.bf16.mxu0 %v4459_v6  ;;  %s338_s18 = scalar_lea.vmem %s292_s9, %s3840_s12  ;;  %v320_v9 = vld [vmem:[%s4724_s20] sm:$0xff]   ;;  %v322_v10 = vld [vmem:[%s4724_s20 + $0x8] sm:$0xff]   ;;  %v324_v11 = vld [vmem:[%s4724_s20 + $0x10] sm:$0xff]   ;;  %661 = vst [vmem:[#allocation2 + $0x24] sm:$0x1] %v660_v33  ;;  %v657_v36 = vsel %vm4735_vm2, 0, %v656_v35 }
  0x1a   : > { %v326_v12 = vld [vmem:[%s4724_s20 + $0x18] sm:$0xff]   ;;  %v328_v13 = vld [vmem:[%s4724_s20 + $0x20] sm:$0xff]   ;;  %v330_v14 = vld [vmem:[%s4724_s20 + $0x28] sm:$0xff]   ;;  %4079 = vmatprep.subr.bf16.mxu1 %v4473_v34  ;;  %658 = vst [vmem:[#allocation2 + $0x18] sm:$0x1] %v657_v36  ;;  %p605_p9 = scmp.gt.s32.totalorder %s4597_s24, 0 }
  0x1b   : > { %v332_v15 = vld [vmem:[%s4724_s20 + $0x30] sm:$0xff]   ;;  %v334_v16 = vld [vmem:[%s4724_s20 + $0x38] sm:$0xff]   ;;  %v4468_v17 = vld [vmem:[%s338_s18] sm:$0xff]   ;;  %p609_p10 = scmp.lt.s32.totalorder %s4597_s24, 1  ;;  %vm762_vm7 = vsmask.f32 4368 }
  0x1c   : > { %4046 = vmatpush3.bf16.msra.mxu0 %v4454_v3  ;;  %4080 = vmatpush3.bf16.msra.mxu1 %v4473_v34  ;;  %v691_v38 = vld [vmem:[#allocation2 + $0x2c] sm:$0x1]  ;;  %v688_v41 = vld [vmem:[#allocation2 + $0x20] sm:$0x1]  ;;  %v665_v44 = vld [vmem:[#allocation2 + $0x3c] sm:$0x1] }
  0x1d   : > { %4047 = vmatprep.subr.bf16.mxu0 %v4455_v4  ;;  %v692_v39 = vsel %vm4745_vm4, 0, %v691_v38  ;;  %v689_v42 = vsel %vm4745_vm4, 0, %v688_v41  ;;  %4081 = vmatprep.subr.bf16.mxu1 %v4475_v40  ;;  %v4476_v43 = vld [vmem:[%s5827_s3 + $0x1a0] sm:$0xff]   ;;  %v666_v45 = vsel %vm4735_vm2, 0, %v665_v44  ;;  %v4477_v46 = vld [vmem:[%s5827_s3 + $0xd8] sm:$0xff]   ;;  %v4480_v53 = vld [vmem:[%s5827_s3 + $0x190] sm:$0xff]  }
  0x1e   : > { %693 = vst [vmem:[#allocation2 + $0x2c] sm:$0x1] %v692_v39  ;;  %690 = vst [vmem:[#allocation2 + $0x20] sm:$0x1] %v689_v42  ;;  %v662_v47 = vld [vmem:[#allocation2 + $0x30] sm:$0x1] }
  0x1f   : > { %667 = vst [vmem:[#allocation2 + $0x3c] sm:$0x1] %v666_v45  ;;  %v4478_v48 = vld [vmem:[%s5827_s3 + $0x198] sm:$0xff]   ;;  %v663_v49 = vsel %vm4735_vm2, 0, %v662_v47  ;;  %v697_v50 = vld [vmem:[#allocation2 + $0x44] sm:$0x1]  ;;  %vm4878_vm9 = vmor %vm648_vm1, %vm762_vm7 }
  0x20   : > { %4048 = vmatpush3.bf16.msra.mxu0 %v4455_v4  ;;  %4082 = vmatpush3.bf16.msra.mxu1 %v4475_v40  ;;  %664 = vst [vmem:[#allocation2 + $0x30] sm:$0x1] %v663_v49  ;;  %v698_v52 = vsel %vm4745_vm4, 0, %v697_v50  ;;  %v694_v54 = vld [vmem:[#allocation2 + $0x38] sm:$0x1]  ;;  %v4482_v60 = vld [vmem:[%s5827_s3 + $0xc8] sm:$0xff]  }
  0x21   : > { %4049 = vmatprep.subr.bf16.mxu0 %v4456_v5  ;;  %4083 = vmatprep.subr.bf16.mxu1 %v4477_v46  ;;  %699 = vst [vmem:[#allocation2 + $0x44] sm:$0x1] %v698_v52  ;;  %v695_v55 = vsel %vm4745_vm4, 0, %v694_v54  ;;  %v671_v56 = vld [vmem:[#allocation2 + $0x54] sm:$0x1]  ;;  %v4483_v61 = vld [vmem:[%s5827_s3 + $0x188] sm:$0xff]  }
  0x22   : > { %696 = vst [vmem:[#allocation2 + $0x38] sm:$0x1] %v695_v55  ;;  %v672_v57 = vsel %vm4735_vm2, 0, %v671_v56  ;;  %v668_v58 = vld [vmem:[#allocation2 + $0x48] sm:$0x1]  ;;  %v4484_v63 = vld [vmem:[%s5827_s3 + $0xc0] sm:$0xff]  }
  0x23   : > { %673 = vst [vmem:[#allocation2 + $0x54] sm:$0x1] %v672_v57  ;;  %v669_v59 = vsel %vm4735_vm2, 0, %v668_v58  ;;  %v703_v62 = vld [vmem:[#allocation2 + $0x5c] sm:$0x1]  ;;  %v4485_v1 = vld [vmem:[%s5827_s3 + $0x180] sm:$0xff]  }
  0x24   : > { %4050 = vmatpush3.bf16.msra.mxu0 %v4456_v5  ;;  %4084 = vmatpush3.bf16.msra.mxu1 %v4477_v46  ;;  %670 = vst [vmem:[#allocation2 + $0x48] sm:$0x1] %v669_v59  ;;  %v704_v0 = vsel %vm4745_vm4, 0, %v703_v62  ;;  %v700_v2 = vld [vmem:[#allocation2 + $0x50] sm:$0x1]  ;;  %v4827_v4 = vld [vmem:[%s5827_s3 + $0x38] sm:$0xff]  }
  0x25   : > { %4051 = vmatprep.subr.bf16.mxu0 %v4457_v7  ;;  %4085 = vmatprep.subr.bf16.mxu1 %v4479_v51  ;;  %705 = vst [vmem:[#allocation2 + $0x5c] sm:$0x1] %v704_v0  ;;  %v701_v3 = vsel %vm4745_vm4, 0, %v700_v2  ;;  %v677_v5 = vld [vmem:[#allocation2 + $0x6c] sm:$0x1]  ;;  %v4832_v6 = vld [vmem:[%s5827_s3 + $0x138] sm:$0xff]  }
  0x26   : > { %702 = vst [vmem:[#allocation2 + $0x50] sm:$0x1] %v701_v3  ;;  %s606_s16 = scalar_select %p605_p9, 1, 0  ;;  %v973_v39 = vld [vmem:[#allocation2 + $0xc] sm:$0xf] }
  0x27   : > { %s4858_s12 = scalar_select %p609_p10, 1, 0  ;;  %v966_v55 = vld [vmem:[#allocation2] sm:$0xf]  ;;  %v977_v62 = vld [vmem:[#allocation2 + $0x14] sm:$0x1] }
  0x28   : > { %4052 = vmatpush3.bf16.msra.mxu0 %v4457_v7  ;;  %4086 = vmatpush3.bf16.msra.mxu1 %v4479_v51  ;;  %v678_v7 = vsel %vm4735_vm2, 0, %v677_v5  ;;  %vm1647_vm11 = vsmask.f32 3328  ;;  %vm1648_vm12 = vsmask.f32 7440  ;;  %vm2505_vm15 = vcmask 1046532  }
  0x29   : > { %4053 = vmatprep.subr.bf16.mxu0 %v4458_v8  ;;  %4087 = vmatprep.subr.bf16.mxu1 %v4482_v60  ;;  %679 = vst [vmem:[#allocation2 + $0x6c] sm:$0x1] %v678_v7  ;;  %v611_v44 = vstv %s4858_s12  ;;  %vm5066_vm13 = vmor %vm1647_vm11, %vm1648_vm12  ;;  %s3536_s24 = sshll.u32 %s4705_s22, 3 }
  0x2a   : > { %vm4919_vm10 = vcmp.eq.s32.totalorder %v611_v44, 1  ;;  %vm5267_vm0 = vmor %vm2504_vm14, %vm2505_vm15  ;;  %s5771_s21 = scalar_lea.vmem %s5831_s7, %s3536_s24 }
  0x2c   : > { %4054 = vmatpush3.bf16.msra.mxu0 %v4458_v8  ;;  %4088 = vmatpush3.bf16.msra.mxu1 %v4482_v60  ;;  %v674_v8 = vld [vmem:[#allocation2 + $0x60] sm:$0x1] }
  0x2d   : > { %4139 = vmatprep.subr.bf16.mxu0 %v4470_v23  ;;  %4089 = vmatprep.subr.bf16.mxu1 %v4484_v63 }
  0x2f   : > { %4056 = vmatmul.mubr.bf16.vlgmr.msra.gmra.mxu0 %v320_v9  ;;  %v675_v9 = vsel %vm4735_vm2, 0, %v674_v8 }
  0x30   : > { %4059 = vmatprep.mubr.bf16.mxu0 %v322_v10  ;;  %4140 = vmatpush3.bf16.msra.mxu0 %v4470_v23  ;;  %676 = vst [vmem:[#allocation2 + $0x60] sm:$0x1] %v675_v9  ;;  %v709_v10 = vld [vmem:[#allocation2 + $0x74] sm:$0x1] }
  0x31   : > { %4141 = vmatprep.subr.bf16.mxu0 %v4472_v29  ;;  %4090 = vmatpush3.bf16.msra.mxu1 %v4484_v63 }
  0x32   : > { %4107 = vmatprep.subr.bf16.mxu1 %v4827_v4 }
  0x34   : > { %4142 = vmatpush3.bf16.msra.mxu0 %v4472_v29 }
  0x35   : > { %4143 = vmatprep.subr.bf16.mxu0 %v4474_v37 }
  0x37   : > { %4060 = vmatmul.mubr.bf16.gmra.mxu0 %v324_v11  ;;  %v710_v11 = vsel %vm4745_vm4, 0, %v709_v10 }
  0x38   : > { %4063 = vmatprep.mubr.bf16.mxu0 %v326_v12  ;;  %4144 = vmatpush3.bf16.msra.mxu0 %v4474_v37  ;;  %v706_v12 = vld [vmem:[#allocation2 + $0x68] sm:$0x1]  ;;  %711 = vst [vmem:[#allocation2 + $0x74] sm:$0x1] %v710_v11 }
  0x39   : > { %4145 = vmatprep.subr.bf16.mxu0 %v4476_v43 }
  0x3c   : > { %4146 = vmatpush3.bf16.msra.mxu0 %v4476_v43 }
  0x3d   : > { %4147 = vmatprep.subr.bf16.mxu0 %v4478_v48 }
  0x3f   : > { %4064 = vmatmul.mubr.bf16.gmra.mxu0 %v328_v13  ;;  %v707_v13 = vsel %vm4745_vm4, 0, %v706_v12 }
  0x40   : > { %4067 = vmatprep.mubr.bf16.mxu0 %v330_v14  ;;  %4148 = vmatpush3.bf16.msra.mxu0 %v4478_v48  ;;  %708 = vst [vmem:[#allocation2 + $0x68] sm:$0x1] %v707_v13  ;;  %v4848_v14 = vld [vmem:[%s5826_s2] ss:$0 sm:$0xff] }
  0x41   : > { %4149 = vmatprep.subr.bf16.mxu0 %v4480_v53 }
  0x44   : > { %4150 = vmatpush3.bf16.msra.mxu0 %v4480_v53 }
  0x45   : > { %4151 = vmatprep.subr.bf16.mxu0 %v4483_v61 }
  0x47   : > { %4068 = vmatmul.mubr.bf16.gmra.mxu0 %v332_v15 }
  0x48   : > { %4071 = vmatprep.mubr.bf16.mxu0 %v334_v16  ;;  %4152 = vmatpush3.bf16.msra.mxu0 %v4483_v61 }
  0x49   : > { %4153 = vmatprep.subr.bf16.mxu0 %v4485_v1 }
  0x4c   : > { %4154 = vmatpush3.bf16.msra.mxu0 %v4485_v1 }
  0x4d   : > { %4203 = vmatprep.subr.bf16.mxu0 %v4832_v6 }
  0x4f   : > { %4072 = vmatmul.mubr.bf16.gmra.mxu0 %v4468_v17  ;;  %v607_v17 = vstv %s606_s16 }
  0x50   : > { %vm4853_vm5 = vcmp.eq.s32.totalorder %v607_v17, 1 }
  0xef   : > { %v4057_v15 = vpop.f32.mrf.mxu0 }
  0xf0   : > { %v515_v16 = vadd.f32 %v4057_v15, %v4848_v14 }
  0xf1   : > { %v506_v19 = vpop.f32.mrf.mxu0 }
  0xf2   : > { %v587_v20 = vmax.f32 %v515_v16, 0.0  ;;  %v507_v21 = vadd.f32 %v4848_v14, %v506_v19  ;;  %v970_v19 = vld [vmem:[#allocation2 + $0x8] sm:$0x1] }
  0xf3   : > { %v4058_v23 = vpop.f32.mrf.mxu0 }
  0xf4   : > { %v3843_v24 = vpack.c.bf16 %v587_v20, %v587_v20  ;;  %v585_v25 = vmax.f32 %v507_v21, 0.0  ;;  %v518_v26 = vadd.f32 %v4058_v23, %v4848_v14 }
  0xf5   : > { %v509_v27 = vpop.f32.mrf.mxu0 }
  0xf6   : > { %v782_v28 = vshrl.u32 %v3843_v24, 16  ;;  %v617_v29 = vsel %vm4853_vm5, %v585_v25, 0.0  ;;  %v588_v30 = vmax.f32 %v518_v26, 0.0  ;;  %v510_v32 = vadd.f32 %v4848_v14, %v509_v27  ;;  %v987_v27 = vld [vmem:[#allocation2 + $0x24] sm:$0xf] }
  0xf7   : > { %v3841_v31 = vpack.c.bf16 %v617_v29, %v617_v29  ;;  %v4061_v33 = vpop.f32.mrf.mxu0  ;;  %v785_v35 = vshll.u32 %v3843_v24, 16 }
  0xf8   : > { %v784_v34 = vrot.slane %v782_v28, 7  ;;  %v3844_v36 = vpack.c.bf16 %v588_v30, %v588_v30  ;;  %v531_v37 = vadd.f32 %v4061_v33, %v4848_v14  ;;  %v586_v42 = vmax.f32 %v510_v32, 0.0 }
  0xf9   : > { %v765_v40 = vshrl.u32 %v3841_v31, 16  ;;  %v768_v41 = vshll.u32 %v3841_v31, 16  ;;  %v522_v43 = vpop.f32.mrf.mxu0 }
  0xfa   : > { %v787_v45 = vor.u32 %v785_v35, %v784_v34  ;;  %v788_v46 = vrot.slane %v784_v34, 4  ;;  %v790_v47 = vshrl.u32 %v3844_v36, 16  ;;  %v793_v48 = vshll.u32 %v3844_v36, 16 }
  0xfb   : > { %v767_v49 = vrot.slane %v765_v40, 7  ;;  %v618_v50 = vsel %vm4853_vm5, %v586_v42, 0.0  ;;  %v591_v51 = vmax.f32 %v531_v37, 0.0  ;;  %v523_v52 = vadd.f32 %v4848_v14, %v522_v43  ;;  %v4062_v53 = vpop.f32.mrf.mxu0  ;;  %v980_v37 = vld [vmem:[#allocation2 + $0x18] sm:$0xf] }
  0xfc   : > { %v974_v54 = vsel %vm4865_vm8, %v787_v45, %v973_v39  ;;  %v792_v56 = vrot.slane %v790_v47, 7  ;;  %v3842_v57 = vpack.c.bf16 %v618_v50, %v618_v50  ;;  %v534_v58 = vadd.f32 %v4062_v53, %v4848_v14 }
  0xfd   : > { %975 = vst [vmem:[#allocation2 + $0xc] sm:$0xf] %v974_v54  ;;  %v770_v59 = vor.u32 %v768_v41, %v767_v49  ;;  %v771_v60 = vrot.slane %v767_v49, 4  ;;  %v3847_v63 = vpack.c.bf16 %v591_v51, %v591_v51  ;;  %v589_v0 = vmax.f32 %v523_v52, 0.0  ;;  %v525_v1 = vpop.f32.mrf.mxu0  ;;  %v991_v52 = vld [vmem:[#allocation2 + $0x2c] sm:$0x1] }
  0xfe   : > { %v795_v2 = vor.u32 %v793_v48, %v792_v56  ;;  %v797_v3 = vrot.slane %v792_v56, 4  ;;  %v773_v5 = vshrl.u32 %v3842_v57, 16  ;;  %v776_v7 = vshll.u32 %v3842_v57, 16 }
  0xff   : > { %v967_v8 = vsel %vm4865_vm8, %v770_v59, %v966_v55  ;;  %v816_v9 = vshrl.u32 %v3847_v63, 16  ;;  %v819_v10 = vshll.u32 %v3847_v63, 16  ;;  %v3845_v11 = vpack.c.bf16 %v589_v0, %v589_v0  ;;  %v4065_v12 = vpop.f32.mrf.mxu0 }
 0x100   : > { %968 = vst [vmem:[#allocation2] sm:$0xf] %v967_v8  ;;  %v796_v13 = vsel %vm4878_vm9, %v788_v46, %v795_v2  ;;  %v978_v15 = vsel %vm4735_vm2, %v797_v3, %v977_v62  ;;  %v775_v16 = vrot.slane %v773_v5, 7  ;;  %v592_v17 = vmax.f32 %v534_v58, 0.0  ;;  %v984_v8 = vld [vmem:[#allocation2 + $0x20] sm:$0x1] }
 0x101   : > { %976 = vst [vmem:[#allocation2 + $0x10] sm:$0xf] %v796_v13  ;;  %979 = vst [vmem:[#allocation2 + $0x14] sm:$0x1] %v978_v15  ;;  %v818_v20 = vrot.slane %v816_v9, 7  ;;  %v799_v21 = vshrl.u32 %v3845_v11, 16  ;;  %v526_v23 = vadd.f32 %v4848_v14, %v525_v1  ;;  %v538_v24 = vpop.f32.mrf.mxu0  ;;  %v547_v29 = vadd.f32 %v4065_v12, %v4848_v14 }
 0x102   : > { %v802_v22 = vshll.u32 %v3845_v11, 16  ;;  %v778_v25 = vor.u32 %v776_v7, %v775_v16  ;;  %v780_v26 = vrot.slane %v775_v16, 4  ;;  %v3848_v28 = vpack.c.bf16 %v592_v17, %v592_v17 }
 0x103   : > { %v821_v30 = vor.u32 %v819_v10, %v818_v20  ;;  %v822_v31 = vrot.slane %v818_v20, 4  ;;  %v801_v32 = vrot.slane %v799_v21, 7  ;;  %v590_v33 = vmax.f32 %v526_v23, 0.0  ;;  %v4066_v34 = vpop.f32.mrf.mxu0 }
 0x104   : > { %v779_v35 = vsel %vm4878_vm9, %v771_v60, %v778_v25  ;;  %v971_v36 = vsel %vm4735_vm2, %v780_v26, %v970_v19  ;;  %v824_v39 = vshrl.u32 %v3848_v28, 16  ;;  %v827_v40 = vshll.u32 %v3848_v28, 16 }
 0x105   : > { %969 = vst [vmem:[#allocation2 + $0x4] sm:$0xf] %v779_v35  ;;  %972 = vst [vmem:[#allocation2 + $0x8] sm:$0x1] %v971_v36  ;;  %v988_v41 = vsel %vm4865_vm8, %v821_v30, %v987_v27  ;;  %v804_v42 = vor.u32 %v802_v22, %v801_v32  ;;  %v805_v43 = vrot.slane %v801_v32, 4  ;;  %v3846_v45 = vpack.c.bf16 %v590_v33, %v590_v33  ;;  %v541_v46 = vpop.f32.mrf.mxu0 }
 0x106   : > { %989 = vst [vmem:[#allocation2 + $0x24] sm:$0xf] %v988_v41  ;;  %v826_v47 = vrot.slane %v824_v39, 7  ;;  %v595_v48 = vmax.f32 %v547_v29, 0.0  ;;  %v539_v49 = vadd.f32 %v4848_v14, %v538_v24  ;;  %v550_v50 = vadd.f32 %v4066_v34, %v4848_v14  ;;  %v1001_v24 = vld [vmem:[#allocation2 + $0x3c] sm:$0xf] }
 0x107   : > { %v981_v51 = vsel %vm4865_vm8, %v804_v42, %v980_v37  ;;  %v807_v53 = vshrl.u32 %v3846_v45, 16  ;;  %v810_v54 = vshll.u32 %v3846_v45, 16  ;;  %v542_v55 = vadd.f32 %v4848_v14, %v541_v46  ;;  %v4069_v56 = vpop.f32.mrf.mxu0  ;;  %v994_v39 = vld [vmem:[#allocation2 + $0x30] sm:$0xf] }
 0x108   : > { %982 = vst [vmem:[#allocation2 + $0x18] sm:$0xf] %v981_v51  ;;  %v829_v57 = vor.u32 %v827_v40, %v826_v47  ;;  %v831_v58 = vrot.slane %v826_v47, 4  ;;  %v3851_v59 = vpack.c.bf16 %v595_v48, %v595_v48  ;;  %v593_v60 = vmax.f32 %v539_v49, 0.0  ;;  %v4901_v62 = vld [vmem:[#allocation2 + $0xc] sm:$0xff]  }
 0x109   : > { %v809_v63 = vrot.slane %v807_v53, 7  ;;  %v596_v0 = vmax.f32 %v550_v50, 0.0  ;;  %v594_v1 = vmax.f32 %v542_v55, 0.0  ;;  %v563_v2 = vadd.f32 %v4069_v56, %v4848_v14  ;;  %v554_v3 = vpop.f32.mrf.mxu0  ;;  %4091 = vmatprep.mubr.bf16.mxu1 %v4901_v62  ;;  %v1005_v47 = vld [vmem:[#allocation2 + $0x44] sm:$0x1] }
 0x10a   : > { %v830_v5 = vsel %vm4878_vm9, %v822_v31, %v829_v57  ;;  %v992_v7 = vsel %vm4735_vm2, %v831_v58, %v991_v52  ;;  %v850_v9 = vshrl.u32 %v3851_v59, 16  ;;  %v853_v10 = vshll.u32 %v3851_v59, 16  ;;  %v998_v53 = vld [vmem:[#allocation2 + $0x38] sm:$0x1] }
 0x10b   : > { %990 = vst [vmem:[#allocation2 + $0x28] sm:$0xf] %v830_v5  ;;  %993 = vst [vmem:[#allocation2 + $0x2c] sm:$0x1] %v992_v7  ;;  %v812_v11 = vor.u32 %v810_v54, %v809_v63  ;;  %v814_v12 = vrot.slane %v809_v63, 4  ;;  %v3849_v13 = vpack.c.bf16 %v593_v60, %v593_v60  ;;  %v3852_v15 = vpack.c.bf16 %v596_v0, %v596_v0  ;;  %v4070_v16 = vpop.f32.mrf.mxu0 }
 0x10c   : > { %v852_v17 = vrot.slane %v850_v9, 7  ;;  %v3850_v19 = vpack.c.bf16 %v594_v1, %v594_v1  ;;  %v599_v20 = vmax.f32 %v563_v2, 0.0  ;;  %v555_v21 = vadd.f32 %v4848_v14, %v554_v3  ;;  %v1015_v0 = vld [vmem:[#allocation2 + $0x54] sm:$0xf] }
 0x10d   : > { %v813_v22 = vsel %vm4878_vm9, %v805_v43, %v812_v11  ;;  %v985_v23 = vsel %vm4735_vm2, %v814_v12, %v984_v8  ;;  %v833_v25 = vshrl.u32 %v3849_v13, 16  ;;  %v836_v26 = vshll.u32 %v3849_v13, 16  ;;  %v557_v27 = vpop.f32.mrf.mxu0 }
 0x10e   : > { %983 = vst [vmem:[#allocation2 + $0x1c] sm:$0xf] %v813_v22  ;;  %986 = vst [vmem:[#allocation2 + $0x20] sm:$0x1] %v985_v23  ;;  %v855_v28 = vor.u32 %v853_v10, %v852_v17  ;;  %v856_v29 = vrot.slane %v852_v17, 4  ;;  %v858_v30 = vshrl.u32 %v3852_v15, 16  ;;  %v3855_v35 = vpack.c.bf16 %v599_v20, %v599_v20 }
 0x10f   : > { %v861_v31 = vshll.u32 %v3852_v15, 16  ;;  %v835_v32 = vrot.slane %v833_v25, 7  ;;  %v841_v33 = vshrl.u32 %v3850_v19, 16  ;;  %v844_v34 = vshll.u32 %v3850_v19, 16  ;;  %v4073_v36 = vpop.f32.mrf.mxu0  ;;  %v1008_v19 = vld [vmem:[#allocation2 + $0x48] sm:$0xf] }
 0x110   : > { %v1002_v37 = vsel %vm4865_vm8, %v855_v28, %v1001_v24  ;;  %v860_v40 = vrot.slane %v858_v30, 7  ;;  %v597_v41 = vmax.f32 %v555_v21, 0.0  ;;  %v566_v42 = vadd.f32 %v4070_v16, %v4848_v14  ;;  %v4490_v16 = vld [vmem:[%s5827_s3 + $0x30] sm:$0xff]  }
 0x111   : > { %1003 = vst [vmem:[#allocation2 + $0x3c] sm:$0xf] %v1002_v37  ;;  %v838_v45 = vor.u32 %v836_v26, %v835_v32  ;;  %v839_v46 = vrot.slane %v835_v32, 4  ;;  %v843_v48 = vrot.slane %v841_v33, 7  ;;  %v884_v49 = vshrl.u32 %v3855_v35, 16  ;;  %v570_v50 = vpop.f32.mrf.mxu0  ;;  %v4491_v24 = vld [vmem:[%s5827_s3 + $0x130] sm:$0xff]  }
 0x112   : > { %v863_v51 = vor.u32 %v861_v31, %v860_v40  ;;  %v865_v52 = vrot.slane %v860_v40, 4  ;;  %v887_v54 = vshll.u32 %v3855_v35, 16  ;;  %v3853_v55 = vpack.c.bf16 %v597_v41, %v597_v41  ;;  %v4952_v23 = vld [vmem:[#allocation2 + $0x24] sm:$0xff]  }
 0x113   : > { %v995_v56 = vsel %vm4865_vm8, %v838_v45, %v994_v39  ;;  %v846_v57 = vor.u32 %v844_v34, %v843_v48  ;;  %v848_v44 = vrot.slane %v843_v48, 4  ;;  %v4925_v58 = vrot.slane %v884_v49, 7  ;;  %v4074_v59 = vpop.f32.mrf.mxu0  ;;  %v4492_v32 = vld [vmem:[%s5827_s3 + $0x28] sm:$0xff]   ;;  %v1012_v48 = vld [vmem:[#allocation2 + $0x50] sm:$0x1] }
 0x114   : > { %996 = vst [vmem:[#allocation2 + $0x30] sm:$0xf] %v995_v56  ;;  %v864_v60 = vsel %vm4878_vm9, %v856_v29, %v863_v51  ;;  %v1006_v63 = vsel %vm4735_vm2, %v865_v52, %v1005_v47  ;;  %v867_v1 = vshrl.u32 %v3853_v55, 16  ;;  %v870_v2 = vshll.u32 %v3853_v55, 16 }
 0x115   : > { %1004 = vst [vmem:[#allocation2 + $0x40] sm:$0xf] %v864_v60  ;;  %1007 = vst [vmem:[#allocation2 + $0x44] sm:$0x1] %v1006_v63  ;;  %v847_v3 = vsel %vm4878_vm9, %v839_v46, %v846_v57  ;;  %v999_v5 = vsel %vm4735_vm2, %v848_v44, %v998_v53  ;;  %v889_v7 = vor.u32 %v887_v54, %v4925_v58  ;;  %v890_v8 = vrot.slane %v4925_v58, 4  ;;  %v573_v9 = vpop.f32.mrf.mxu0  ;;  %v4937_v10 = vld [vmem:[#allocation2 + $0x18] sm:$0xff]  }
 0x116   : > { %997 = vst [vmem:[#allocation2 + $0x34] sm:$0xf] %v847_v3  ;;  %1000 = vst [vmem:[#allocation2 + $0x38] sm:$0x1] %v999_v5  ;;  %v4939_v11 = vrot.slane %v867_v1, 7  ;;  %v600_v12 = vmax.f32 %v566_v42, 0.0  ;;  %v558_v13 = vadd.f32 %v4848_v14, %v557_v27  ;;  %v579_v15 = vadd.f32 %v4073_v36, %v4848_v14  ;;  %4092 = vmatmul.mubr.bf16.vlgmr.msra.gmra.mxu1 %v4937_v10 }
 0x117   : > { %v1016_v17 = vsel %vm4865_vm8, %v889_v7, %v1015_v0  ;;  %v571_v20 = vadd.f32 %v4848_v14, %v570_v50  ;;  %v582_v21 = vadd.f32 %v4074_v59, %v4848_v14  ;;  %v574_v22 = vadd.f32 %v4848_v14, %v573_v9  ;;  %4108 = vmatpush3.bf16.msra.mxu1 %v4827_v4  ;;  %v1019_v36 = vld [vmem:[#allocation2 + $0x5c] sm:$0x1]  ;;  %v4496_v44 = vld [vmem:[%s5827_s3 + $0x20] sm:$0xff]   ;;  %v1029_v9 = vld [vmem:[#allocation2 + $0x6c] sm:$0xf] }
 0x118   : > { %1017 = vst [vmem:[#allocation2 + $0x54] sm:$0xf] %v1016_v17  ;;  %v872_v25 = vor.u32 %v870_v2, %v4939_v11  ;;  %v873_v26 = vrot.slane %v4939_v11, 4  ;;  %v3856_v27 = vpack.c.bf16 %v600_v12, %v600_v12  ;;  %v598_v28 = vmax.f32 %v558_v13, 0.0  ;;  %4155 = vmatprep.mubr.bf16.mxu0 %v4937_v10  ;;  %4095 = vmatprep.mubr.bf16.mxu1 %v4952_v23  ;;  %v4497_v59 = vld [vmem:[%s5827_s3 + $0x120] sm:$0xff]   ;;  %v4498_v58 = vld [vmem:[%s5827_s3 + $0x18] sm:$0xff]  }
 0x119   : > { %v603_v14 = vmax.f32 %v579_v15, 0.0  ;;  %v601_v29 = vmax.f32 %v571_v20, 0.0  ;;  %v604_v30 = vmax.f32 %v582_v21, 0.0  ;;  %v602_v31 = vmax.f32 %v574_v22, 0.0  ;;  %4156 = vmatmul.mubr.bf16.vlgmr.msra.gmra.mxu0 %v4952_v23  ;;  %4109 = vmatprep.subr.bf16.mxu1 %v4490_v16  ;;  %v1022_v12 = vld [vmem:[#allocation2 + $0x60] sm:$0xf] }
 0x11a   : > { %v1009_v33 = vsel %vm4865_vm8, %v872_v25, %v1008_v19  ;;  %v892_v34 = vshrl.u32 %v3856_v27, 16  ;;  %v895_v35 = vshll.u32 %v3856_v27, 16  ;;  %v3854_v4 = vpack.c.bf16 %v598_v28, %v598_v28  ;;  %4204 = vmatpush3.bf16.msra.mxu0 %v4832_v6  ;;  %v4495_v6 = vld [vmem:[%s5827_s3 + $0x128] sm:$0xff]  }
 0x11b   : > { %1010 = vst [vmem:[#allocation2 + $0x48] sm:$0xf] %v1009_v33  ;;  %v635_v37 = vsel %vm4919_vm10, %v603_v14, 0.0  ;;  %v3857_v39 = vpack.c.bf16 %v601_v29, %v601_v29  ;;  %v636_v40 = vsel %vm4919_vm10, %v604_v30, 0.0  ;;  %v4973_v41 = vpack.c.bf16 %v602_v31, %v602_v31  ;;  %4205 = vmatprep.subr.bf16.mxu0 %v4491_v24  ;;  %4110 = vmatpush3.bf16.msra.mxu1 %v4490_v16  ;;  %v1026_v14 = vld [vmem:[#allocation2 + $0x68] sm:$0x1] }
 0x11c   : > { %v894_v42 = vrot.slane %v892_v34, 7  ;;  %v875_v45 = vshrl.u32 %v3854_v4, 16  ;;  %v878_v46 = vshll.u32 %v3854_v4, 16  ;;  %v3859_v47 = vpack.c.bf16 %v635_v37, %v635_v37  ;;  %4111 = vmatprep.subr.bf16.mxu1 %v4492_v32  ;;  %v4981_v57 = vld [vmem:[#allocation2 + $0x3c] sm:$0xff]   ;;  %v4502_v4 = vld [vmem:[%s5827_s3 + $0x10] sm:$0xff]  }
 0x11d   : > { %v901_v49 = vshrl.u32 %v3857_v39, 16  ;;  %v904_v50 = vshll.u32 %v3857_v39, 16  ;;  %v3860_v51 = vpack.c.bf16 %v636_v40, %v636_v40  ;;  %v909_v52 = vshrl.u32 %v4973_v41, 16  ;;  %v4979_v43 = vld [vmem:[#allocation2 + $0x30] sm:$0xff]   ;;  %v4501_v29 = vld [vmem:[%s5827_s3 + $0x118] sm:$0xff]  }
 0x11e   : > { %v897_v53 = vor.u32 %v895_v35, %v894_v42  ;;  %v899_v54 = vrot.slane %v894_v42, 4  ;;  %v877_v55 = vrot.slane %v875_v45, 7  ;;  %v918_v56 = vshrl.u32 %v3859_v47, 16  ;;  %4206 = vmatpush3.bf16.msra.mxu0 %v4491_v24  ;;  %4096 = vmatmul.mubr.bf16.gmra.mxu1 %v4979_v43  ;;  %v5009_v24 = vld [vmem:[#allocation2 + $0x10] sm:$0xf] }
 0x11f   : > { %v921_v60 = vshll.u32 %v3859_v47, 16  ;;  %v903_v63 = vrot.slane %v901_v49, 7  ;;  %v926_v0 = vshrl.u32 %v3860_v51, 16  ;;  %v929_v1 = vshll.u32 %v3860_v51, 16  ;;  %4159 = vmatprep.mubr.bf16.mxu0 %v4979_v43  ;;  %4112 = vmatpush3.bf16.msra.mxu1 %v4492_v32  ;;  %v1623_v39 = vld [vmem:[#allocation2 + $0x18] sm:$0xf] }
 0x120   : > { %v898_v2 = vsel %vm4878_vm9, %v890_v8, %v897_v53  ;;  %v1020_v3 = vsel %vm4735_vm2, %v899_v54, %v1019_v36  ;;  %v880_v5 = vor.u32 %v878_v46, %v877_v55  ;;  %v882_v7 = vrot.slane %v877_v55, 4  ;;  %4099 = vmatprep.mubr.bf16.mxu1 %v4981_v57  ;;  %4207 = vmatprep.subr.bf16.mxu0 %v4495_v6  ;;  %v1620_v8 = vld [vmem:[#allocation2 + $0xc] sm:$0xf]  ;;  %v5030_v42 = vld [vmem:[#allocation2 + $0x14] sm:$0x1] }
 0x121   : > { %1018 = vst [vmem:[#allocation2 + $0x58] sm:$0xf] %v898_v2  ;;  %1021 = vst [vmem:[#allocation2 + $0x5c] sm:$0x1] %v1020_v3  ;;  %v920_v13 = vrot.slane %v918_v56, 7  ;;  %v906_v15 = vor.u32 %v904_v50, %v903_v63  ;;  %v907_v16 = vrot.slane %v903_v63, 4  ;;  %4160 = vmatmul.mubr.bf16.gmra.mxu0 %v4981_v57  ;;  %4113 = vmatprep.subr.bf16.mxu1 %v4496_v44 }
 0x122   : > { %v928_v17 = vrot.slane %v926_v0, 7  ;;  %v881_v19 = vsel %vm4878_vm9, %v873_v26, %v880_v5  ;;  %v1013_v20 = vsel %vm4735_vm2, %v882_v7, %v1012_v48  ;;  %v911_v21 = vrot.slane %v909_v52, 7  ;;  %4208 = vmatpush3.bf16.msra.mxu0 %v4495_v6  ;;  %v1033_v26 = vld [vmem:[#allocation2 + $0x74] sm:$0x1]  ;;  %v5038_v48 = vld [vmem:[#allocation2 + $0x1c] sm:$0xf] }
 0x123   : > { %v912_v22 = vshll.u32 %v4973_v41, 16  ;;  %1011 = vst [vmem:[#allocation2 + $0x4c] sm:$0xf] %v881_v19  ;;  %1014 = vst [vmem:[#allocation2 + $0x50] sm:$0x1] %v1013_v20  ;;  %v923_v25 = vor.u32 %v921_v60, %v920_v13  ;;  %v924_v27 = vrot.slane %v920_v13, 4  ;;  %v1023_v11 = vsel %vm4865_vm8, %v906_v15, %v1022_v12  ;;  %4209 = vmatprep.subr.bf16.mxu0 %v4497_v59 }
 0x124   : > { %v931_v28 = vor.u32 %v929_v1, %v928_v17  ;;  %1024 = vst [vmem:[#allocation2 + $0x60] sm:$0xf] %v1023_v11  ;;  %v933_v30 = vrot.slane %v928_v17, 4  ;;  %v916_v32 = vrot.slane %v911_v21, 4  ;;  %4114 = vmatpush3.bf16.msra.mxu1 %v4496_v44  ;;  %v1675_v33 = vshrl.u32 %v1620_v8, 16  ;;  %v4503_v46 = vld [vmem:[%s5827_s3 + $0x110] sm:$0xff]  }
 0x125   : > { %v914_v31 = vor.u32 %v912_v22, %v911_v21  ;;  %v1030_v34 = vsel %vm4865_vm8, %v923_v25, %v1029_v9  ;;  %4115 = vmatprep.subr.bf16.mxu1 %v4498_v58  ;;  %v1678_v36 = vshll.u32 %v1620_v8, 16  ;;  %v1684_v37 = vshll.u32 %v5009_v24, 16  ;;  %v4504_v49 = vld [vmem:[%s5827_s3 + $0x8] sm:$0xff]   ;;  %v5043_v52 = vld [vmem:[#allocation2 + $0x20] sm:$0x1]  ;;  %v4551_v15 = vld [vmem:[%s5829_s5 + $0x38] sm:$0xff]  }
 0x126   : > { %v932_v35 = vsel %vm4878_vm9, %v924_v27, %v931_v28  ;;  %1031 = vst [vmem:[#allocation2 + $0x6c] sm:$0xf] %v1030_v34  ;;  %v1034_v40 = vsel %vm4735_vm2, %v933_v30, %v1033_v26  ;;  %v1027_v41 = vsel %vm4735_vm2, %v916_v32, %v1026_v14  ;;  %4210 = vmatpush3.bf16.msra.mxu0 %v4497_v59  ;;  %v1677_v45 = vrot.slane %v1675_v33, 4  ;;  %v1626_v54 = vld [vmem:[#allocation2 + $0x24] sm:$0xf]  ;;  %v4508_v0 = vld [vmem:[%s5827_s3 + $0x108] sm:$0xff]  }
 0x127   : > { %1032 = vst [vmem:[#allocation2 + $0x70] sm:$0xf] %v932_v35  ;;  %v915_v38 = vsel %vm4878_vm9, %v907_v16, %v914_v31  ;;  %1035 = vst [vmem:[#allocation2 + $0x74] sm:$0x1] %v1034_v40  ;;  %4211 = vmatprep.subr.bf16.mxu0 %v4501_v29  ;;  %v1680_v47 = vrot.slane %v1678_v36, 5  ;;  %v5035_v6 = vrot.slane %v1684_v37, 5 }
 0x128   : > { %1025 = vst [vmem:[#allocation2 + $0x64] sm:$0xf] %v915_v38  ;;  %1028 = vst [vmem:[#allocation2 + $0x68] sm:$0x1] %v1027_v41  ;;  %v1688_v61 = vshrl.u32 %v5009_v24, 16  ;;  %4116 = vmatpush3.bf16.msra.mxu1 %v4498_v58  ;;  %v1699_v18 = vshrl.u32 %v1623_v39, 16 }
 0x129   : > { %4117 = vmatprep.subr.bf16.mxu1 %v4502_v4  ;;  %v1681_v50 = vor.u32 %v1680_v47, %v1677_v45  ;;  %v1702_v53 = vshll.u32 %v1623_v39, 16  ;;  %v1694_v56 = vshll.u32 %v5030_v42, 16  ;;  %v1708_v59 = vshll.u32 %v5038_v48, 16  ;;  %v5049_v60 = vld [vmem:[#allocation2 + $0x28] sm:$0xf]  ;;  %v5051_v63 = vld [vmem:[#allocation2 + $0x54] sm:$0xff]  }
 0x12a   : > { %v1690_v51 = vrot.slane %v1688_v61, 4  ;;  %v5045_v55 = vld [vmem:[#allocation2 + $0x48] sm:$0xff]   ;;  %4212 = vmatpush3.bf16.msra.mxu0 %v4501_v29  ;;  %v1701_v44 = vrot.slane %v1699_v18, 4  ;;  %v1712_v3 = vshrl.u32 %v5038_v48, 16  ;;  %v1723_v9 = vshrl.u32 %v1626_v54, 16  ;;  %v4509_v22 = vld [vmem:[%s5827_s3] sm:$0xff]  }
 0x12b   : > { %4213 = vmatprep.subr.bf16.mxu0 %v4503_v46  ;;  %v1704_v2 = vrot.slane %v1702_v53, 5  ;;  %4100 = vmatmul.mubr.bf16.gmra.mxu1 %v5045_v55  ;;  %v1682_v5 = vrot.slane %v1681_v50, 4  ;;  %v5060_v7 = vrot.slane %v1708_v59, 5  ;;  %v1726_v12 = vshll.u32 %v1626_v54, 16  ;;  %v1629_v13 = vld [vmem:[#allocation2 + $0x30] sm:$0xf] }
 0x12c   : > { %v1691_v1 = vor.u32 %v1690_v51, %v5035_v6  ;;  %4163 = vmatprep.mubr.bf16.mxu0 %v5045_v55  ;;  %4103 = vmatprep.mubr.bf16.mxu1 %v5051_v63  ;;  %v1718_v17 = vshll.u32 %v5043_v52, 16  ;;  %v1696_v8 = vrot.slane %v1694_v56, 5  ;;  %v1714_v20 = vrot.slane %v1712_v3, 4  ;;  %v4510_v25 = vld [vmem:[%s5827_s3 + $0x100] sm:$0xff]   ;;  %v5084_v29 = vld [vmem:[#allocation2 + $0x2c] sm:$0x1] }
 0x12d   : > { %4164 = vmatmul.mubr.bf16.gmra.mxu0 %v5051_v63  ;;  %4118 = vmatpush3.bf16.msra.mxu1 %v4502_v4  ;;  %v1705_v19 = vor.u32 %v1704_v2, %v1701_v44  ;;  %v1725_v21 = vrot.slane %v1723_v9, 4  ;;  %v1728_v27 = vrot.slane %v1726_v12, 5  ;;  %v1732_v11 = vshll.u32 %v5049_v60, 16  ;;  %v5087_v31 = vld [vmem:[#allocation2 + $0x34] sm:$0xf]  ;;  %v4506_v32 = vld [vmem:[#allocation2] sm:$0xff]  }
 0x12e   : > { %v1692_v16 = vrot.slane %v1691_v1, 4  ;;  %4214 = vmatpush3.bf16.msra.mxu0 %v4503_v46  ;;  %4119 = vmatprep.subr.bf16.mxu1 %v4504_v49  ;;  %v1687_v28 = vsel %vm5066_vm13, %v1682_v5, %v5035_v6  ;;  %v1715_v14 = vor.u32 %v1714_v20, %v5060_v7  ;;  %v1736_v30 = vshrl.u32 %v5049_v60, 16  ;;  %v5092_v33 = vld [vmem:[%s5827_s3 + $0x78] sm:$0xff]   ;;  %v4507_v45 = vld [vmem:[#allocation2 + $0x6c] sm:$0xff]   ;;  %v5109_v56 = vld [vmem:[#allocation2 + $0x40] sm:$0xf] }
 0x12f   : > { %v4505_v58 = vld [vmem:[#allocation2 + $0x60] sm:$0xff]   ;;  %4215 = vmatprep.subr.bf16.mxu0 %v4508_v0  ;;  %v1720_v34 = vrot.slane %v1718_v17, 5  ;;  %v1729_v35 = vor.u32 %v1728_v27, %v1725_v21  ;;  %v5094_v4 = vrot.slane %v1732_v11, 5  ;;  %v1747_v36 = vshrl.u32 %v1629_v13, 16  ;;  %v5096_v38 = vld [vmem:[#allocation2 + $0x38] sm:$0x1] }
 0x130   : > { %4167 = vmatprep.mubr.bf16.mxu0 %v4505_v58  ;;  %v1697_v26 = vsel %vm5066_vm13, %v1692_v16, %v1696_v8  ;;  %v1706_v37 = vrot.slane %v1705_v19, 4  ;;  %v1716_v39 = vrot.slane %v1715_v14, 4  ;;  %v1738_v40 = vrot.slane %v1736_v30, 4  ;;  %v1632_v18 = vld [vmem:[#allocation2 + $0x3c] sm:$0xf] }
 0x131   : > { %4120 = vmatpush3.bf16.msra.mxu1 %v4504_v49  ;;  %v1750_v41 = vshll.u32 %v1629_v13, 16  ;;  %v5098_v46 = vcombine.low %v1687_v28, %v1697_v26  ;;  %v1742_v47 = vshll.u32 %v5084_v29, 16  ;;  %v1756_v6 = vshll.u32 %v5087_v31, 16  ;;  %v5106_v49 = vld [vmem:[%s5827_s3 + $0xb8] sm:$0xff]   ;;  %v5120_v5 = vld [vmem:[#allocation2 + $0x44] sm:$0x1] }
 0x132   : > { %4216 = vmatpush3.bf16.msra.mxu0 %v4508_v0  ;;  %4121 = vmatprep.subr.bf16.mxu1 %v4509_v22  ;;  %v1760_v61 = vshrl.u32 %v5087_v31, 16  ;;  %v1730_v50 = vrot.slane %v1729_v35, 4  ;;  %v1739_v51 = vor.u32 %v1738_v40, %v5094_v4  ;;  %v1749_v53 = vrot.slane %v1747_v36, 4  ;;  %v5129_v21 = vld [vmem:[#allocation2 + $0x4c] sm:$0xf]  ;;  %v4513_v26 = vld [vmem:[%s5827_s3 + $0x70] sm:$0xff]  }
 0x133   : > { %4217 = vmatprep.subr.bf16.mxu0 %v4510_v25  ;;  %4104 = vmatmul.mubr.bf16.gmra.mxu1 %v4505_v58  ;;  %v1752_v54 = vrot.slane %v1750_v41, 5  ;;  %v1721_v44 = vsel %vm5066_vm13, %v1716_v39, %v1720_v34  ;;  %v5113_v59 = vrot.slane %v1756_v6, 5  ;;  %v1766_v1 = vshll.u32 %v5096_v38, 16  ;;  %v1635_v58 = vld [vmem:[#allocation2 + $0x48] sm:$0xf]  ;;  %v4514_v39 = vld [vmem:[%s5827_s3 + $0xb0] sm:$0xff]  }
 0x134   : > { %4123 = vmatprep.mubr.bf16.mxu1 %v4506_v32  ;;  %v1762_v0 = vrot.slane %v1760_v61, 4  ;;  %v1711_v2 = vsel %vm5066_vm13, %v1706_v37, %v5060_v7  ;;  %v1740_v3 = vrot.slane %v1739_v51, 4  ;;  %v1771_v9 = vshrl.u32 %v1632_v18, 16  ;;  %v1638_v37 = vld [vmem:[#allocation2 + $0x54] sm:$0xf] }
 0x135   : > { %4168 = vmatmul.mubr.bf16.gmra.mxu0 %v4507_v45  ;;  %4122 = vmatpush3.bf16.msra.mxu1 %v4509_v22  ;;  %v1774_v13 = vshll.u32 %v1632_v18, 16  ;;  %v1780_v16 = vshll.u32 %v5109_v56, 16  ;;  %v1784_v17 = vshrl.u32 %v5109_v56, 16  ;;  %v5126_v8 = vcombine.low %v1711_v2, %v1721_v44  ;;  %v5151_v6 = vld [vmem:[#allocation2 + $0x58] sm:$0xf] }
 0x136   : > { %4219 = vmatprep.mubr.bf16.mxu0 %v5098_v46  ;;  %4218 = vmatpush3.bf16.msra.mxu0 %v4510_v25  ;;  %v1763_v12 = vor.u32 %v1762_v0, %v5113_v59  ;;  %v1744_v7 = vrot.slane %v1742_v47, 5  ;;  %v1753_v19 = vor.u32 %v1752_v54, %v1749_v53  ;;  %v1773_v20 = vrot.slane %v1771_v9, 4  ;;  %v4515_v53 = vld [vmem:[%s5827_s3 + $0x68] sm:$0xff]  }
 0x137   : > { %4171 = vmatprep.subr.bf16.mxu1 %v5092_v33  ;;  %4267 = vmatprep.subr.bf16.mxu0 %v5106_v49  ;;  %v1735_v22 = vsel %vm5066_vm13, %v1730_v50, %v5094_v4  ;;  %v5134_v25 = vrot.slane %v1766_v1, 5  ;;  %v1776_v27 = vrot.slane %v1774_v13, 5  ;;  %v5136_v11 = vrot.slane %v1780_v16, 5  ;;  %v4516_v9 = vld [vmem:[%s5827_s3 + $0xa8] sm:$0xff]  }
 0x138   : > { %v1745_v28 = vsel %vm5066_vm13, %v1740_v3, %v1744_v7  ;;  %v1786_v14 = vrot.slane %v1784_v17, 4  ;;  %v1790_v30 = vshll.u32 %v5120_v5, 16  ;;  %v1795_v32 = vshrl.u32 %v1635_v58, 16  ;;  %v1617_v3 = vld [vmem:[#allocation2] sm:$0xf] }
 0x139   : > { %v1764_v34 = vrot.slane %v1763_v12, 4  ;;  %v1777_v35 = vor.u32 %v1776_v27, %v1773_v20  ;;  %v1798_v36 = vshll.u32 %v1635_v58, 16  ;;  %v1804_v4 = vshll.u32 %v5129_v21, 16  ;;  %v5175_v58 = vld [vmem:[#allocation2 + $0x4] sm:$0xf] }
 0x13a   : > { %v1754_v40 = vrot.slane %v1753_v19, 4  ;;  %v1787_v41 = vor.u32 %v1786_v14, %v5136_v11  ;;  %v1797_v45 = vrot.slane %v1795_v32, 4  ;;  %v1808_v47 = vshrl.u32 %v5129_v21, 16  ;;  %v5180_v19 = vld [vmem:[#allocation2 + $0x5c] sm:$0x1] }
 0x13b   : > { %4124 = vmatmul.mubr.bf16.vlgmr.msra.gmra.mxu1 %v4901_v62  ;;  %v5155_v61 = vcombine.low %v1735_v22, %v1745_v28  ;;  %v1778_v18 = vrot.slane %v1777_v35, 4  ;;  %v5157_v62 = vld [vmem:[#allocation2 + $0x50] sm:$0x1]  ;;  %v1800_v50 = vrot.slane %v1798_v36, 5  ;;  %v5159_v51 = vrot.slane %v1804_v4, 5  ;;  %v4517_v28 = vld [vmem:[%s5827_s3 + $0x60] sm:$0xff]  }
 0x13c   : > { %4172 = vmatpush3.bf16.msra.mxu1 %v5092_v33  ;;  %4127 = vmatprep.mubr.bf16.mxu1 %v4937_v10  ;;  %v1788_v54 = vrot.slane %v1787_v41, 4  ;;  %v1810_v44 = vrot.slane %v1808_v47, 4  ;;  %v1819_v33 = vshrl.u32 %v1638_v37, 16  ;;  %v1822_v0 = vshll.u32 %v1638_v37, 16  ;;  %v1641_v35 = vld [vmem:[#allocation2 + $0x60] sm:$0xf] }
 0x13d   : > { %4220 = vmatmul.mubr.bf16.vlgmr.msra.gmra.mxu0 %v5126_v8  ;;  %4173 = vmatprep.subr.bf16.mxu1 %v4513_v26  ;;  %v1769_v10 = vsel %vm5066_vm13, %v1764_v34, %v5134_v25  ;;  %v1792_v1 = vrot.slane %v1790_v30, 5  ;;  %v1828_v2 = vshll.u32 %v5151_v6, 16  ;;  %v1801_v12 = vor.u32 %v1800_v50, %v1797_v45 }
 0x13e   : > { %4223 = vmatprep.mubr.bf16.mxu0 %v5155_v61  ;;  %4268 = vmatpush3.bf16.msra.mxu0 %v5106_v49  ;;  %v1814_v13 = vshll.u32 %v5157_v62, 16  ;;  %v1821_v16 = vrot.slane %v1819_v33, 4  ;;  %v1824_v17 = vrot.slane %v1822_v0, 5  ;;  %v1811_v7 = vor.u32 %v1810_v44, %v5159_v51  ;;  %v4520_v44 = vld [vmem:[%s5827_s3 + $0x98] sm:$0xff]  }
 0x13f   : > { %4269 = vmatprep.subr.bf16.mxu0 %v4514_v39  ;;  %v1793_v49 = vsel %vm5066_vm13, %v1788_v54, %v1792_v1  ;;  %v5182_v20 = vrot.slane %v1828_v2, 5  ;;  %v1832_v22 = vshrl.u32 %v5151_v6, 16  ;;  %v1759_v25 = vsel %vm5066_vm13, %v1754_v40, %v5113_v59 }
 0x140   : > { %4174 = vmatpush3.bf16.msra.mxu1 %v4513_v26  ;;  %v1783_v27 = vsel %vm5066_vm13, %v1778_v18, %v5136_v11  ;;  %v1651_v26 = vshrl.u32 %v1617_v3, 16  ;;  %v1825_v14 = vor.u32 %v1824_v17, %v1821_v16  ;;  %v1654_v32 = vshll.u32 %v1617_v3, 16  ;;  %v4518_v11 = vld [vmem:[%s5827_s3 + $0xa0] sm:$0xff]   ;;  %v5212_v18 = vld [vmem:[#allocation2 + $0x8] sm:$0x1] }
 0x141   : > { %4175 = vmatprep.subr.bf16.mxu1 %v4515_v53  ;;  %v1834_v30 = vrot.slane %v1832_v22, 4  ;;  %v1660_v34 = vshll.u32 %v5175_v58, 16  ;;  %v5196_v36 = vcombine.low %v1759_v25, %v1769_v10  ;;  %v5198_v59 = vcombine.low %v1783_v27, %v1793_v49  ;;  %v4521_v25 = vld [vmem:[%s5827_s3 + $0x50] sm:$0xff]  }
 0x142   : > { %4270 = vmatpush3.bf16.msra.mxu0 %v4514_v39  ;;  %v1816_v4 = vrot.slane %v1814_v13, 5  ;;  %v1838_v37 = vshll.u32 %v5180_v19, 16  ;;  %v5204_v39 = vld [vmem:[#allocation2 + $0x64] sm:$0xf]  ;;  %v1802_v40 = vrot.slane %v1801_v12, 4  ;;  %v1812_v41 = vrot.slane %v1811_v7, 4 }
 0x143   : > { %4128 = vmatmul.mubr.bf16.gmra.mxu1 %v4952_v23  ;;  %4271 = vmatprep.subr.bf16.mxu0 %v4516_v9  ;;  %v4519_v23 = vld [vmem:[%s5827_s3 + $0x58] sm:$0xff]   ;;  %v1835_v45 = vor.u32 %v1834_v30, %v5182_v20  ;;  %v1653_v47 = vrot.slane %v1651_v26, 4  ;;  %v1656_v50 = vrot.slane %v1654_v32, 5  ;;  %v5214_v54 = vrot.slane %v1660_v34, 5  ;;  %v5222_v12 = vld [vmem:[#allocation2 + $0x68] sm:$0x1] }
 0x144   : > { %4176 = vmatpush3.bf16.msra.mxu1 %v4515_v53  ;;  %4131 = vmatprep.mubr.bf16.mxu1 %v4979_v43  ;;  %v1664_v53 = vshrl.u32 %v5175_v58, 16  ;;  %v1843_v43 = vshrl.u32 %v1641_v35, 16  ;;  %v1826_v33 = vrot.slane %v1825_v14, 4  ;;  %v1846_v10 = vshll.u32 %v1641_v35, 16 }
 0x145   : > { %4224 = vmatmul.mubr.bf16.gmra.mxu0 %v5196_v36  ;;  %4177 = vmatprep.subr.bf16.mxu1 %v4517_v28  ;;  %v1836_v0 = vrot.slane %v1835_v45, 4  ;;  %v1852_v1 = vshll.u32 %v5204_v39, 16  ;;  %v1840_v2 = vrot.slane %v1838_v37, 5  ;;  %v1856_v16 = vshrl.u32 %v5204_v39, 16 }
 0x146   : > { %4227 = vmatprep.mubr.bf16.mxu0 %v5198_v59  ;;  %4272 = vmatpush3.bf16.msra.mxu0 %v4516_v9  ;;  %v1666_v3 = vrot.slane %v1664_v53, 4  ;;  %v1845_v13 = vrot.slane %v1843_v43, 4  ;;  %v1817_v9 = vsel %vm5066_vm13, %v1812_v41, %v1816_v4  ;;  %v1670_v17 = vshll.u32 %v5212_v18, 16  ;;  %v4524_v53 = vld [vmem:[%s5827_s3 + $0x88] sm:$0xff]  }
 0x147   : > { %4273 = vmatprep.subr.bf16.mxu0 %v4518_v11  ;;  %v1848_v49 = vrot.slane %v1846_v10, 5  ;;  %v1854_v7 = vrot.slane %v1852_v1, 5  ;;  %v1841_v22 = vsel %vm5066_vm13, %v1836_v0, %v1840_v2  ;;  %v1657_v27 = vor.u32 %v1656_v50, %v1653_v47  ;;  %v2464_v47 = vld [vmem:[#allocation2] sm:$0xe] }
 0x148   : > { %4178 = vmatpush3.bf16.msra.mxu1 %v4517_v28  ;;  %v1667_v26 = vor.u32 %v1666_v3, %v5214_v54  ;;  %v1858_v14 = vrot.slane %v1856_v16, 4  ;;  %v1807_v28 = vsel %vm5066_vm13, %v1802_v40, %v5159_v51  ;;  %v1862_v32 = vshll.u32 %v5222_v12, 16 }
 0x149   : > { %4179 = vmatprep.subr.bf16.mxu1 %v4519_v23  ;;  %v1849_v30 = vor.u32 %v1848_v49, %v1845_v13  ;;  %v2509_v34 = vrot.slane %v5175_v58, 5  ;;  %v5240_v35 = vcombine.low %v1807_v28, %v1817_v9  ;;  %v1831_v4 = vsel %vm5066_vm13, %v1826_v33, %v5182_v20  ;;  %v4526_v9 = vld [vmem:[%s5827_s3 + $0x80] sm:$0xff]   ;;  %v2465_v49 = vld [vmem:[#allocation2 + $0xc] sm:$0xe] }
 0x14a   : > { %4274 = vmatpush3.bf16.msra.mxu0 %v4518_v11  ;;  %v4522_v11 = vld [vmem:[%s5827_s3 + $0x90] sm:$0xff]   ;;  %v1668_v37 = vrot.slane %v1667_v26, 4  ;;  %v1859_v51 = vor.u32 %v1858_v14, %v1854_v7  ;;  %v5249_v40 = vcombine.low %v1831_v4, %v1841_v22  ;;  %v1658_v58 = vrot.slane %v1657_v27, 4  ;;  %v4528_v27 = vld [vmem:[%s5827_s3 + $0x238] sm:$0xff]  }
 0x14b   : > { %4132 = vmatmul.mubr.bf16.gmra.mxu1 %v4981_v57  ;;  %4275 = vmatprep.subr.bf16.mxu0 %v4520_v44  ;;  %v4523_v57 = vld [vmem:[%s5827_s3 + $0x48] sm:$0xff]   ;;  %v1672_v20 = vrot.slane %v1670_v17, 5  ;;  %v2511_v45 = vrot.slane %v2509_v34, 4  ;;  %v2512_v43 = vrot.slane %v5212_v18, 5  ;;  %v2516_v33 = vrot.slane %v5009_v24, 5  ;;  %v4525_v24 = vld [vmem:[%s5827_s3 + $0x40] sm:$0xff]  }
 0x14c   : > { %4180 = vmatpush3.bf16.msra.mxu1 %v4519_v23  ;;  %4135 = vmatprep.mubr.bf16.mxu1 %v5045_v55  ;;  %v1860_v41 = vrot.slane %v1859_v51, 4  ;;  %v1850_v23 = vrot.slane %v1849_v30, 4  ;;  %v1864_v55 = vrot.slane %v1862_v32, 5  ;;  %v1663_v10 = vsel %vm5066_vm13, %v1658_v58, %v5214_v54 }
 0x14d   : > { %4228 = vmatmul.mubr.bf16.gmra.mxu0 %v5240_v35  ;;  %4181 = vmatprep.subr.bf16.mxu1 %v4521_v25  ;;  %v1673_v50 = vsel %vm5066_vm13, %v1668_v37, %v1672_v20  ;;  %v3732_v1 = vrot.slane %v2464_v47, 9  ;;  %v2513_v18 = vsel %vm5267_vm0, %v2511_v45, %v2512_v43  ;;  %v2523_v2 = vrot.slane %v5038_v48, 5  ;;  %v4530_v37 = vld [vmem:[%s5827_s3 + $0x230] sm:$0xff]   ;;  %v4532_v45 = vld [vmem:[%s5827_s3 + $0x228] sm:$0xff]   ;;  %v4533_v43 = vld [vmem:[%s5827_s3 + $0x1e0] sm:$0xff]  }
 0x14e   : > { %4231 = vmatprep.mubr.bf16.mxu0 %v5249_v40  ;;  %4276 = vmatpush3.bf16.msra.mxu0 %v4520_v44  ;;  %v1865_v0 = vsel %vm5066_vm13, %v1860_v41, %v1864_v55  ;;  %v3666_v3 = vcombine.low %v1663_v10, %v1673_v50  ;;  %v1855_v13 = vsel %vm5066_vm13, %v1850_v23, %v1854_v7  ;;  %v2518_v17 = vrot.slane %v2516_v33, 4  ;;  %v2468_v41 = vld [vmem:[#allocation2 + $0x30] sm:$0xe]  ;;  %v4534_v10 = vld [vmem:[%s5827_s3 + $0x220] sm:$0xff]  }
 0x14f   : > { %4277 = vmatprep.subr.bf16.mxu0 %v4522_v11  ;;  %v5283_v16 = vcombine.low %v1855_v13, %v1865_v0  ;;  %v2510_v54 = vsel %vm5267_vm0, %v3732_v1, %v2509_v34  ;;  %v2525_v7 = vrot.slane %v2523_v2, 4  ;;  %v2519_v22 = vrot.slane %v5030_v42, 5  ;;  %v4529_v34 = vld [vmem:[%s5827_s3 + $0x1f0] sm:$0xff]   ;;  %v2470_v13 = vld [vmem:[#allocation2 + $0x48] sm:$0xe] }
 0x150   : > { %4182 = vmatpush3.bf16.msra.mxu1 %v4521_v25  ;;  %v3758_v48 = vcombine.low %v2510_v54, %v2513_v18  ;;  %v2466_v25 = vld [vmem:[#allocation2 + $0x18] sm:$0xe]  ;;  %v2526_v26 = vrot.slane %v5043_v52, 5  ;;  %v3733_v14 = vrot.slane %v2465_v49, 9  ;;  %v2530_v30 = vrot.slane %v5049_v60, 5  ;;  %v4552_v44 = vld [vmem:[%s5829_s5 + $0x30] sm:$0xff]  }
 0x151   : > { %4183 = vmatprep.subr.bf16.mxu1 %v4523_v57  ;;  %v2520_v28 = vsel %vm5267_vm0, %v2518_v17, %v2519_v22  ;;  %v3734_v32 = vrot.slane %v2466_v25, 9  ;;  %v2537_v4 = vrot.slane %v5087_v31, 5  ;;  %v2533_v20 = vrot.slane %v5084_v29, 5  ;;  %v4535_v18 = vld [vmem:[%s5827_s3 + $0x1d8] sm:$0xff]   ;;  %v4538_v25 = vld [vmem:[%s5827_s3 + $0x210] sm:$0xff]  }
 0x152   : > { %4278 = vmatpush3.bf16.msra.mxu0 %v4522_v11  ;;  %v2527_v42 = vsel %vm5267_vm0, %v2525_v7, %v2526_v26  ;;  %v2517_v52 = vsel %vm5267_vm0, %v3733_v14, %v2516_v33  ;;  %v2532_v51 = vrot.slane %v2530_v30, 4  ;;  %v2540_v23 = vrot.slane %v5096_v38, 5  ;;  %v4536_v54 = vld [vmem:[%s5827_s3 + $0x218] sm:$0xff]   ;;  %v4537_v7 = vld [vmem:[%s5827_s3 + $0x1d0] sm:$0xff]   ;;  %v4539_v14 = vld [vmem:[%s5827_s3 + $0x1c8] sm:$0xff]  }
 0x153   : > { %4136 = vmatmul.mubr.bf16.gmra.mxu1 %v5051_v63  ;;  %4279 = vmatprep.subr.bf16.mxu0 %v4524_v53  ;;  %v4527_v63 = vld [vmem:[%s5827_s3 + $0x1f8] sm:$0xff]   ;;  %v5311_v11 = vcombine.low %v2517_v52, %v2520_v28  ;;  %v2524_v60 = vsel %vm5267_vm0, %v3734_v32, %v2523_v2  ;;  %v2539_v58 = vrot.slane %v2537_v4, 4  ;;  %v2544_v50 = vrot.slane %v5109_v56, 5  ;;  %v2471_v28 = vld [vmem:[#allocation2 + $0x54] sm:$0xe]  ;;  %v4540_v32 = vld [vmem:[%s5827_s3 + $0x208] sm:$0xff]  }
 0x154   : > { %4184 = vmatpush3.bf16.msra.mxu1 %v4523_v57  ;;  %4187 = vmatprep.mubr.bf16.mxu1 %v3666_v3  ;;  %v5319_v31 = vcombine.low %v2524_v60, %v2527_v42  ;;  %v2467_v57 = vld [vmem:[#allocation2 + $0x24] sm:$0xe]  ;;  %v2534_v47 = vsel %vm5267_vm0, %v2532_v51, %v2533_v20  ;;  %v2551_v33 = vrot.slane %v5129_v21, 5  ;;  %v2547_v3 = vrot.slane %v5120_v5, 5  ;;  %v4544_v51 = vld [vmem:[%s5827_s3 + $0x170] sm:$0xff]  }
 0x155   : > { %4232 = vmatmul.mubr.bf16.gmra.mxu0 %v5283_v16  ;;  %4185 = vmatprep.subr.bf16.mxu1 %v4525_v24  ;;  %v3735_v55 = vrot.slane %v2467_v57, 9  ;;  %v2541_v29 = vsel %vm5267_vm0, %v2539_v58, %v2540_v23  ;;  %v2546_v1 = vrot.slane %v2544_v50, 4  ;;  %v3738_v49 = vrot.slane %v2470_v13, 9  ;;  %v4542_v60 = vld [vmem:[%s5827_s3 + $0x200] sm:$0xff]   ;;  %v1644_v57 = vld [vmem:[#allocation2 + $0x6c] sm:$0xf] }
 0x156   : > { %4280 = vmatpush3.bf16.msra.mxu0 %v4524_v53  ;;  %4283 = vmatprep.mubr.bf16.mxu0 %v3758_v48  ;;  %v3736_v53 = vrot.slane %v2468_v41, 9  ;;  %v2553_v2 = vrot.slane %v2551_v33, 4  ;;  %v3739_v42 = vrot.slane %v2471_v28, 9  ;;  %v1870_v41 = vshll.u32 %v1644_v57, 16 }
 0x157   : > { %4281 = vmatprep.subr.bf16.mxu0 %v4526_v9  ;;  %v2531_v38 = vsel %vm5267_vm0, %v3735_v55, %v2530_v30  ;;  %v2548_v48 = vsel %vm5267_vm0, %v2546_v1, %v2547_v3  ;;  %v2561_v30 = vrot.slane %v5180_v19, 5 }
 0x158   : > { %4186 = vmatpush3.bf16.msra.mxu1 %v4525_v24  ;;  %v5343_v0 = vcombine.low %v2531_v38, %v2534_v47  ;;  %v2538_v56 = vsel %vm5267_vm0, %v3736_v53, %v2537_v4  ;;  %v2469_v24 = vld [vmem:[#allocation2 + $0x3c] sm:$0xe]  ;;  %v4541_v4 = vld [vmem:[%s5827_s3 + $0x1c0] sm:$0xff]  }
 0x159   : > { %4235 = vmatprep.subr.bf16.mxu1 %v4527_v63  ;;  %v5351_v21 = vcombine.low %v2538_v56, %v2541_v29  ;;  %v3737_v17 = vrot.slane %v2469_v24, 9  ;;  %v4547_v53 = vld [vmem:[%s5827_s3 + $0x158] sm:$0xff]  }
 0x15a   : > { %4282 = vmatpush3.bf16.msra.mxu0 %v4526_v9  ;;  %v2554_v9 = vrot.slane %v5157_v62, 5 }
 0x15b   : > { %4188 = vmatmul.mubr.bf16.vlgmr.msra.gmra.mxu1 %v5098_v46  ;;  %4331 = vmatprep.subr.bf16.mxu0 %v4528_v27  ;;  %v4531_v46 = vld [vmem:[%s5827_s3 + $0x1e8] sm:$0xff]   ;;  %v2545_v62 = vsel %vm5267_vm0, %v3737_v17, %v2544_v50  ;;  %v1872_v50 = vrot.slane %v1870_v41, 5 }
 0x15c   : > { %4236 = vmatpush3.bf16.msra.mxu1 %v4527_v63  ;;  %4191 = vmatprep.mubr.bf16.mxu1 %v5126_v8  ;;  %v2558_v63 = vrot.slane %v5151_v6, 5  ;;  %v2555_v5 = vsel %vm5267_vm0, %v2553_v2, %v2554_v9  ;;  %v5374_v22 = vcombine.low %v2545_v62, %v2548_v48  ;;  %v2552_v6 = vsel %vm5267_vm0, %v3738_v49, %v2551_v33  ;;  %v4549_v9 = vld [vmem:[%s5827_s3 + $0x148] sm:$0xff]  }
 0x15d   : > { %4284 = vmatmul.mubr.bf16.vlgmr.msra.gmra.mxu0 %v5311_v11  ;;  %4237 = vmatprep.subr.bf16.mxu1 %v4529_v34  ;;  %v2473_v17 = vld [vmem:[#allocation2 + $0x6c] sm:$0xe] }
 0x15e   : > { %4287 = vmatprep.mubr.bf16.mxu0 %v5319_v31  ;;  %4332 = vmatpush3.bf16.msra.mxu0 %v4528_v27  ;;  %v5382_v27 = vcombine.low %v2552_v6, %v2555_v5  ;;  %v2560_v26 = vrot.slane %v2558_v63, 4  ;;  %v2559_v52 = vsel %vm5267_vm0, %v3739_v42, %v2558_v63  ;;  %v3741_v63 = vrot.slane %v2473_v17, 9 }
 0x15f   : > { %4333 = vmatprep.subr.bf16.mxu0 %v4530_v37 }
 0x160   : > { %4238 = vmatpush3.bf16.msra.mxu1 %v4529_v34  ;;  %v2562_v34 = vsel %vm5267_vm0, %v2560_v26, %v2561_v30 }
 0x161   : > { %4239 = vmatprep.subr.bf16.mxu1 %v4531_v46  ;;  %v5401_v19 = vcombine.low %v2559_v52, %v2562_v34 }
 0x162   : > { %4334 = vmatpush3.bf16.msra.mxu0 %v4530_v37  ;;  %v4543_v37 = vld [vmem:[%s5827_s3 + $0x178] sm:$0xff]  }
 0x163   : > { %4192 = vmatmul.mubr.bf16.gmra.mxu1 %v5155_v61  ;;  %4335 = vmatprep.subr.bf16.mxu0 %v4532_v45 }
 0x164   : > { %4240 = vmatpush3.bf16.msra.mxu1 %v4531_v46  ;;  %4195 = vmatprep.mubr.bf16.mxu1 %v5196_v36  ;;  %v4545_v46 = vld [vmem:[%s5827_s3 + $0x168] sm:$0xff]  }
 0x165   : > { %4288 = vmatmul.mubr.bf16.gmra.mxu0 %v5343_v0  ;;  %4241 = vmatprep.subr.bf16.mxu1 %v4533_v43 }
 0x166   : > { %4291 = vmatprep.mubr.bf16.mxu0 %v5351_v21  ;;  %4336 = vmatpush3.bf16.msra.mxu0 %v4532_v45  ;;  %v2565_v45 = vrot.slane %v5204_v39, 5  ;;  %v2472_v39 = vld [vmem:[#allocation2 + $0x60] sm:$0xe] }
 0x167   : > { %4337 = vmatprep.subr.bf16.mxu0 %v4534_v10 }
 0x168   : > { %4242 = vmatpush3.bf16.msra.mxu1 %v4533_v43  ;;  %v2567_v29 = vrot.slane %v2565_v45, 4  ;;  %v1646_v43 = vld [vmem:[#allocation2 + $0x74] sm:$0x1] }
 0x169   : > { %4243 = vmatprep.subr.bf16.mxu1 %v4535_v18  ;;  %v2575_v48 = vrot.slane %v1646_v43, 5 }
 0x16a   : > { %4338 = vmatpush3.bf16.msra.mxu0 %v4534_v10  ;;  %v3740_v10 = vrot.slane %v2472_v39, 9 }
 0x16b   : > { %4196 = vmatmul.mubr.bf16.gmra.mxu1 %v5198_v59  ;;  %4339 = vmatprep.subr.bf16.mxu0 %v4536_v54 }
 0x16c   : > { %4244 = vmatpush3.bf16.msra.mxu1 %v4535_v18  ;;  %4199 = vmatprep.mubr.bf16.mxu1 %v5240_v35  ;;  %v4548_v18 = vld [vmem:[%s5827_s3 + $0x150] sm:$0xff]  }
 0x16d   : > { %4292 = vmatmul.mubr.bf16.gmra.mxu0 %v5374_v22  ;;  %4245 = vmatprep.subr.bf16.mxu1 %v4537_v7 }
 0x16e   : > { %4295 = vmatprep.mubr.bf16.mxu0 %v5382_v27  ;;  %4340 = vmatpush3.bf16.msra.mxu0 %v4536_v54 }
 0x16f   : > { %4341 = vmatprep.subr.bf16.mxu0 %v4538_v25 }
 0x170   : > { %4246 = vmatpush3.bf16.msra.mxu1 %v4537_v7  ;;  %v4550_v7 = vld [vmem:[%s5827_s3 + $0x140] sm:$0xff]  }
 0x171   : > { %4247 = vmatprep.subr.bf16.mxu1 %v4539_v14 }
 0x172   : > { %4342 = vmatpush3.bf16.msra.mxu0 %v4538_v25 }
 0x173   : > { %4200 = vmatmul.mubr.bf16.gmra.mxu1 %v5249_v40  ;;  %4343 = vmatprep.subr.bf16.mxu0 %v4540_v32 }
 0x174   : > { %4248 = vmatpush3.bf16.msra.mxu1 %v4539_v14  ;;  %4251 = vmatprep.mubr.bf16.mxu1 %v5126_v8  ;;  %v5416_v8 = vld [vmem:[#allocation2 + $0x70] sm:$0xf] }
 0x175   : > { %4296 = vmatmul.mubr.bf16.gmra.mxu0 %v5401_v19  ;;  %4249 = vmatprep.subr.bf16.mxu1 %v4541_v4  ;;  %v1876_v58 = vshll.u32 %v5416_v8, 16  ;;  %v1880_v20 = vshrl.u32 %v5416_v8, 16  ;;  %v2572_v56 = vrot.slane %v5416_v8, 5 }
 0x176   : > { %4344 = vmatpush3.bf16.msra.mxu0 %v4540_v32  ;;  %4347 = vmatprep.mubr.bf16.mxu0 %v5319_v31 }
 0x177   : > { %4345 = vmatprep.subr.bf16.mxu0 %v4542_v60  ;;  %v1878_v23 = vrot.slane %v1876_v58, 5  ;;  %v1882_v55 = vrot.slane %v1880_v20, 4  ;;  %v2574_v54 = vrot.slane %v2572_v56, 4  ;;  %v2573_v62 = vsel %vm5267_vm0, %v3741_v63, %v2572_v56 }
 0x178   : > { %4250 = vmatpush3.bf16.msra.mxu1 %v4541_v4 }
 0x179   : > { %4299 = vmatprep.subr.bf16.mxu1 %v4543_v37  ;;  %v1883_v33 = vor.u32 %v1882_v55, %v1878_v23  ;;  %v2576_v49 = vsel %vm5267_vm0, %v2574_v54, %v2575_v48 }
 0x17a   : > { %4346 = vmatpush3.bf16.msra.mxu0 %v4542_v60  ;;  %v3815_v6 = vcombine.low %v2573_v62, %v2576_v49 }
 0x17b   : > { %4252 = vmatmul.mubr.bf16.vlgmr.msra.gmra.mxu1 %v5155_v61  ;;  %v1867_v61 = vshrl.u32 %v1644_v57, 16  ;;  %v1884_v24 = vrot.slane %v1883_v33, 4  ;;  %4363 = vmatprep.subr.bf16.mxu0 %v4551_v15  ;;  %v4557_v57 = vld [vmem:[%s5829_s5 + $0x8] sm:$0xff]  }
 0x17c   : > { %4300 = vmatpush3.bf16.msra.mxu1 %v4543_v37  ;;  %4255 = vmatprep.mubr.bf16.mxu1 %v5196_v36  ;;  %v4546_v36 = vld [vmem:[%s5827_s3 + $0x160] sm:$0xff]  }
 0x17d   : > { %4348 = vmatmul.mubr.bf16.vlgmr.msra.gmra.mxu0 %v5343_v0  ;;  %4301 = vmatprep.subr.bf16.mxu1 %v4544_v51  ;;  %v1869_v47 = vrot.slane %v1867_v61, 4 }
 0x17e   : > { %4351 = vmatprep.mubr.bf16.mxu0 %v5351_v21  ;;  %4364 = vmatpush3.bf16.msra.mxu0 %v4551_v15 }
 0x17f   : > { %v1873_v38 = vor.u32 %v1872_v50, %v1869_v47  ;;  %4365 = vmatprep.subr.bf16.mxu0 %v4552_v44 }
 0x180   : > { %4302 = vmatpush3.bf16.msra.mxu1 %v4544_v51  ;;  %v4556_v51 = vld [vmem:[%s5829_s5 + $0x10] sm:$0xff]  }
 0x181   : > { %4303 = vmatprep.subr.bf16.mxu1 %v4545_v46  ;;  %v1874_v3 = vrot.slane %v1873_v38, 4 }
 0x182   : > { %4366 = vmatpush3.bf16.msra.mxu0 %v4552_v44 }
 0x183   : > { %4256 = vmatmul.mubr.bf16.gmra.mxu1 %v5198_v59  ;;  %v2568_v59 = vrot.slane %v5222_v12, 5  ;;  %v2566_v12 = vsel %vm5267_vm0, %v3740_v10, %v2565_v45  ;;  %v4558_v45 = vld [vmem:[%s5829_s5] sm:$0xff]  }
 0x184   : > { %4304 = vmatpush3.bf16.msra.mxu1 %v4545_v46  ;;  %4259 = vmatprep.mubr.bf16.mxu1 %v5240_v35  ;;  %v1886_v35 = vshll.u32 %v1646_v43, 16 }
 0x185   : > { %4352 = vmatmul.mubr.bf16.gmra.mxu0 %v5374_v22  ;;  %4305 = vmatprep.subr.bf16.mxu1 %v4546_v36  ;;  %v2569_v1 = vsel %vm5267_vm0, %v2567_v29, %v2568_v59 }
 0x186   : > { %4355 = vmatprep.mubr.bf16.mxu0 %v5382_v27  ;;  %v3790_v2 = vcombine.low %v2566_v12, %v2569_v1  ;;  %v1888_v13 = vrot.slane %v1886_v35, 5 }
 0x188   : > { %4306 = vmatpush3.bf16.msra.mxu1 %v4546_v36 }
 0x189   : > { %4307 = vmatprep.subr.bf16.mxu1 %v4547_v53 }
 0x18b   : > { %4260 = vmatmul.mubr.bf16.gmra.mxu1 %v5249_v40  ;;  %v1889_v40 = vsel %vm5066_vm13, %v1884_v24, %v1888_v13 }
 0x18c   : > { %4308 = vmatpush3.bf16.msra.mxu1 %v4547_v53  ;;  %4263 = vmatprep.mubr.bf16.mxu1 %v5283_v16  ;;  %v1879_v16 = vsel %vm5066_vm13, %v1874_v3, %v1878_v23 }
 0x18d   : > { %4356 = vmatmul.mubr.bf16.gmra.mxu0 %v5401_v19  ;;  %4309 = vmatprep.subr.bf16.mxu1 %v4548_v18  ;;  %v3723_v5 = vcombine.low %v1879_v16, %v1889_v40 }
 0x18e   : > { %4359 = vmatprep.mubr.bf16.mxu0 %v3790_v2 }
 0x190   : > { %4310 = vmatpush3.bf16.msra.mxu1 %v4548_v18 }
 0x191   : > { %4311 = vmatprep.subr.bf16.mxu1 %v4549_v9 }
 0x193   : > { %4264 = vmatmul.mubr.bf16.gmra.mxu1 %v3723_v5 }
 0x194   : > { %4312 = vmatpush3.bf16.msra.mxu1 %v4549_v9  ;;  %4315 = vmatprep.mubr.bf16.mxu1 %v5311_v11 }
 0x195   : > { %4360 = vmatmul.mubr.bf16.gmra.mxu0 %v3815_v6  ;;  %4313 = vmatprep.subr.bf16.mxu1 %v4550_v7 }
 0x198   : > { %4314 = vmatpush3.bf16.msra.mxu1 %v4550_v7 }
 0x199   : > { %4395 = vmatprep.subr.bf16.mxu1 %v4551_v15 }
 0x19b   : > { %4316 = vmatmul.mubr.bf16.vlgmr.msra.gmra.mxu1 %v5319_v31  ;;  %v4553_v31 = vld [vmem:[%s5829_s5 + $0x28] sm:$0xff]  }
 0x19c   : > { %4319 = vmatprep.mubr.bf16.mxu1 %v5343_v0  ;;  %4403 = vmatpush3.bf16.msra.mxu1 %v4551_v15 }
 0x19d   : > { %4396 = vmatprep.subr.bf16.mxu1 %v4552_v44  ;;  %4367 = vmatprep.subr.bf16.mxu0 %v4553_v31 }
 0x19e   : > { %4368 = vmatpush3.bf16.msra.mxu0 %v4553_v31 }
 0x1a0   : > { %4404 = vmatpush3.bf16.msra.mxu1 %v4552_v44 }
 0x1a1   : > { %4397 = vmatprep.subr.bf16.mxu1 %v4553_v31 }
 0x1a3   : > { %4320 = vmatmul.mubr.bf16.gmra.mxu1 %v5351_v21 }
 0x1a4   : > { %4323 = vmatprep.mubr.bf16.mxu1 %v5374_v22  ;;  %4405 = vmatpush3.bf16.msra.mxu1 %v4553_v31 }
 0x1ab   : > { %4324 = vmatmul.mubr.bf16.gmra.mxu1 %v5382_v27  ;;  %v4554_v27 = vld [vmem:[%s5829_s5 + $0x20] sm:$0xff]  }
 0x1ac   : > { %4327 = vmatprep.mubr.bf16.mxu1 %v5401_v19  ;;  %4369 = vmatprep.subr.bf16.mxu0 %v4554_v27  ;;  %v4555_v19 = vld [vmem:[%s5829_s5 + $0x18] sm:$0xff]  }
 0x1ad   : > { %4398 = vmatprep.subr.bf16.mxu1 %v4554_v27  ;;  %4370 = vmatpush3.bf16.msra.mxu0 %v4554_v27 }
 0x1ae   : > { %4406 = vmatpush3.bf16.msra.mxu1 %v4554_v27  ;;  %4371 = vmatprep.subr.bf16.mxu0 %v4555_v19 }
 0x1af   : > { %4399 = vmatprep.subr.bf16.mxu1 %v4555_v19 }
 0x1b1   : > { %4372 = vmatpush3.bf16.msra.mxu0 %v4555_v19 }
 0x1b2   : > { %4407 = vmatpush3.bf16.msra.mxu1 %v4555_v19  ;;  %4373 = vmatprep.subr.bf16.mxu0 %v4556_v51 }
 0x1b3   : > { %4328 = vmatmul.mubr.bf16.gmra.mxu1 %v3790_v2  ;;  %4400 = vmatprep.subr.bf16.mxu1 %v4556_v51 }
 0x1b5   : > { %4374 = vmatpush3.bf16.msra.mxu0 %v4556_v51 }
 0x1b6   : > { %4408 = vmatpush3.bf16.msra.mxu1 %v4556_v51  ;;  %4375 = vmatprep.subr.bf16.mxu0 %v4557_v57 }
 0x1b7   : > { %4401 = vmatprep.subr.bf16.mxu1 %v4557_v57 }
 0x1b9   : > { %4376 = vmatpush3.bf16.msra.mxu0 %v4557_v57 }
 0x1ba   : > { %4409 = vmatpush3.bf16.msra.mxu1 %v4557_v57  ;;  %4377 = vmatprep.subr.bf16.mxu0 %v4558_v45 }
 0x1bb   : > { %4402 = vmatprep.subr.bf16.mxu1 %v4558_v45 }
 0x1bd   : > { %4378 = vmatpush3.bf16.msra.mxu0 %v4558_v45 }
 0x1be   : > { %4410 = vmatpush3.bf16.msra.mxu1 %v4558_v45 }
 0x1d6   : > { %v5476_v11 = vpop.f32.mrf.mxu1 }
 0x1d8   : > { %v5483_v21 = vpop.f32.mrf.mxu1 }
 0x1d9   : > { %v5481_v0 = vpop.f32.mrf.mxu0 }
 0x1da   : > { %v4094_v25 = vpop.f32.mrf.mxu1 }
 0x1db   : > { %v5485_v22 = vpop.f32.mrf.mxu0 }
 0x1dc   : > { %v1222_v14 = vpop.f32.mrf.mxu1 }
 0x1dd   : > { %v5490_v26 = vpop.f32.mrf.mxu0 }
 0x1de   : > { %v4097_v30 = vpop.f32.mrf.mxu1 }
 0x1df   : > { %v1541_v28 = vpop.f32.mrf.mxu0 }
 0x1e0   : > { %v1235_v42 = vpop.f32.mrf.mxu1 }
 0x1e1   : > { %v5492_v32 = vpop.f32.mrf.mxu0 }
 0x1e2   : > { %v5496_v4 = vpop.f32.mrf.mxu1 }
 0x1e3   : > { %v5494_v34 = vpop.f32.mrf.mxu0 }
 0x1e4   : > { %v5503_v60 = vpop.f32.mrf.mxu1 }
 0x1e5   : > { %v5498_v52 = vpop.f32.mrf.mxu0 }
 0x1e7   : > { %v5505_v37 = vpop.f32.mrf.mxu0 }
 0x1eb   : > { %v4101_v8 = vpop.f32.mrf.mxu1 }
 0x1ed   : > { %v4165_v46 = vpop.f32.mrf.mxu0  ;;  %v1251_v58 = vpop.f32.mrf.mxu1 }
 0x1ef   : > { %v5513_v20 = vpop.f32.mrf.mxu0  ;;  %v4102_v61 = vpop.f32.mrf.mxu1 }
 0x1f1   : > { %v4166_v41 = vpop.f32.mrf.mxu0  ;;  %v1254_v36 = vpop.f32.mrf.mxu1 }
 0x1f3   : > { %v1573_v23 = vpop.f32.mrf.mxu0  ;;  %v4105_v55 = vpop.f32.mrf.mxu1 }
 0x1f5   : > { %v4169_v47 = vpop.f32.mrf.mxu0  ;;  %v1267_v50 = vpop.f32.mrf.mxu1 }
 0x1f7   : > { %v1586_v53 = vpop.f32.mrf.mxu0  ;;  %v4106_v29 = vpop.f32.mrf.mxu1 }
 0x1f9   : > { %v5518_v43 = vpop.f32.mrf.mxu0  ;;  %v1270_v39 = vpop.f32.mrf.mxu1 }
 0x1fb   : > { %v5520_v33 = vpop.f32.mrf.mxu0  ;;  %v4125_v59 = vpop.f32.mrf.mxu1 }
 0x1fc   : > { %v1379_v38 = vadd.f32 %v4125_v59, %v5476_v11 }
 0x1fd   : > { %v5523_v35 = vpop.f32.mrf.mxu0  ;;  %v1370_v56 = vpop.f32.mrf.mxu1 }
 0x1fe   : > { %v1371_v10 = vadd.f32 %v1370_v56, %v5483_v21  ;;  %v5527_v1 = vadd.f32 %v5481_v0, %v1379_v38 }
 0x1ff   : > { %v5529_v18 = vpop.f32.mrf.mxu0  ;;  %v4126_v24 = vpop.f32.mrf.mxu1 }
 0x200   : > { %v1382_v12 = vadd.f32 %v4126_v24, %v4094_v25  ;;  %v5532_v2 = vadd.f32 %v5485_v22, %v1371_v10 }
 0x201   : > { %v5534_v3 = vpop.f32.mrf.mxu0  ;;  %v1373_v13 = vpop.f32.mrf.mxu1 }
 0x202   : > { %v1374_v54 = vadd.f32 %v1373_v13, %v1222_v14  ;;  %v5537_v9 = vadd.f32 %v5490_v26, %v1382_v12 }
 0x203   : > { %v5539_v17 = vpop.f32.mrf.mxu0  ;;  %v4129_v40 = vpop.f32.mrf.mxu1 }
 0x204   : > { %v1395_v48 = vadd.f32 %v4129_v40, %v4097_v30  ;;  %v5541_v16 = vadd.f32 %v1541_v28, %v1374_v54 }
 0x205   : > { %v4225_v63 = vpop.f32.mrf.mxu0  ;;  %v1386_v49 = vpop.f32.mrf.mxu1 }
 0x206   : > { %v1387_v5 = vadd.f32 %v1386_v49, %v1235_v42  ;;  %v1607_v7 = vadd.f32 %v5492_v32, %v1395_v48 }
 0x207   : > { %v5544_v62 = vpop.f32.mrf.mxu0  ;;  %v4130_v6 = vpop.f32.mrf.mxu1 }
 0x208   : > { %v1398_v15 = vadd.f32 %v4130_v6, %v5496_v4  ;;  %v5548_v44 = vadd.f32 %v5494_v34, %v1387_v5 }
 0x209   : > { %v5550_v11 = vpop.f32.mrf.mxu0  ;;  %v1389_v31 = vpop.f32.mrf.mxu1 }
 0x20a   : > { %v1390_v0 = vadd.f32 %v1389_v31, %v5503_v60  ;;  %v5554_v21 = vadd.f32 %v5498_v52, %v1398_v15 }
 0x20b   : > { %v5556_v22 = vpop.f32.mrf.mxu0  ;;  %v4133_v25 = vpop.f32.mrf.mxu1 }
 0x20c   : > { %v1411_v27 = vadd.f32 %v4133_v25, %v4101_v8  ;;  %v5559_v26 = vadd.f32 %v5505_v37, %v1390_v0 }
 0x20d   : > { %v4229_v14 = vpop.f32.mrf.mxu0  ;;  %v1402_v28 = vpop.f32.mrf.mxu1 }
 0x20e   : > { %v1403_v30 = vadd.f32 %v1402_v28, %v1251_v58  ;;  %v1611_v32 = vadd.f32 %v4165_v46, %v1411_v27 }
 0x20f   : > { %v5561_v42 = vpop.f32.mrf.mxu0  ;;  %v4134_v34 = vpop.f32.mrf.mxu1 }
 0x210   : > { %v1414_v4 = vadd.f32 %v4134_v34, %v4102_v61  ;;  %v5564_v19 = vadd.f32 %v5513_v20, %v1403_v30 }
 0x211   : > { %v5566_v52 = vpop.f32.mrf.mxu0  ;;  %v1405_v60 = vpop.f32.mrf.mxu1 }
 0x212   : > { %v1406_v51 = vadd.f32 %v1405_v60, %v1254_v36  ;;  %v5568_v57 = vadd.f32 %v4166_v41, %v1414_v4 }
 0x213   : > { %v5570_v8 = vpop.f32.mrf.mxu0  ;;  %v4137_v37 = vpop.f32.mrf.mxu1 }
 0x214   : > { %5848 = vst [vmem:[#allocation3_spill] sm:$0xff] %v5570_v8  ;;  %v1427_v45 = vadd.f32 %v4137_v37, %v4105_v55  ;;  %v5572_v59 = vadd.f32 %v1573_v23, %v1406_v51 }
 0x215   : > { %v4233_v46 = vpop.f32.mrf.mxu0  ;;  %v1418_v58 = vpop.f32.mrf.mxu1 }
 0x216   : > { %v1419_v38 = vadd.f32 %v1418_v58, %v1267_v50  ;;  %v1615_v56 = vadd.f32 %v4169_v47, %v1427_v45 }
 0x217   : > { %v5574_v61 = vpop.f32.mrf.mxu0  ;;  %v4138_v20 = vpop.f32.mrf.mxu1 }
 0x218   : > { %5849 = vst [vmem:[#allocation4_spill] sm:$0xff] %v5574_v61  ;;  %v1430_v10 = vadd.f32 %v4138_v20, %v4106_v29  ;;  %v5576_v24 = vadd.f32 %v1586_v53, %v1419_v38 }
 0x219   : > { %v5578_v12 = vpop.f32.mrf.mxu0  ;;  %v1421_v41 = vpop.f32.mrf.mxu1 }
 0x21a   : > { %5850 = vst [vmem:[#allocation5_spill] sm:$0xff] %v5578_v12  ;;  %v1422_v36 = vadd.f32 %v1421_v41, %v1270_v39  ;;  %v5581_v13 = vadd.f32 %v5518_v43, %v1430_v10 }
 0x21b   : > { %v5583_v55 = vpop.f32.mrf.mxu0  ;;  %v4189_v23 = vpop.f32.mrf.mxu1 }
 0x21c   : > { %5851 = vst [vmem:[#allocation6_spill] sm:$0xff] %v5581_v13  ;;  %5852 = vst [vmem:[#allocation7_spill] sm:$0xff] %v5583_v55  ;;  %v5586_v54 = vadd.f32 %v5520_v33, %v1422_v36 }
 0x21d   : > { %v5588_v47 = vpop.f32.mrf.mxu0  ;;  %v2021_v50 = vpop.f32.mrf.mxu1 }
 0x21e   : > { %5853 = vst [vmem:[#allocation8_spill] sm:$0xff] %v5586_v54  ;;  %v2084_v61 = vadd.f32 %v2021_v50, %v5532_v2 }
 0x21f   : > { %v5590_v40 = vpop.f32.mrf.mxu0  ;;  %v4190_v53 = vpop.f32.mrf.mxu1 }
 0x221   : > { %v5592_v29 = vpop.f32.mrf.mxu0  ;;  %v2024_v48 = vpop.f32.mrf.mxu1 }
 0x223   : > { %v5594_v49 = vpop.f32.mrf.mxu0  ;;  %v4193_v39 = vpop.f32.mrf.mxu1 }
 0x224   : > { %v2090_v43 = vadd.f32 %v4193_v39, %v1607_v7 }
 0x225   : > { %v5596_v5 = vpop.f32.mrf.mxu0  ;;  %v2037_v6 = vpop.f32.mrf.mxu1 }
 0x226   : > { %v5598_v15 = vadd.f32 %v4225_v63, %v2090_v43 }
 0x227   : > { %v5600_v33 = vpop.f32.mrf.mxu0  ;;  %v5602_v31 = vpop.f32.mrf.mxu1 }
 0x229   : > { %v5604_v0 = vpop.f32.mrf.mxu0  ;;  %v5606_v25 = vpop.f32.mrf.mxu1 }
 0x22a   : > { %5854 = vst [vmem:[#allocation9_spill] sm:$0xff] %v5604_v0 }
 0x22b   : > { %v5608_v27 = vpop.f32.mrf.mxu0  ;;  %v4197_v28 = vpop.f32.mrf.mxu1 }
 0x22c   : > { %5855 = vst [vmem:[#allocation10_spill] sm:$0xff] %v5608_v27  ;;  %v2094_v30 = vadd.f32 %v4197_v28, %v1611_v32 }
 0x22d   : > { %v5610_v34 = vpop.f32.mrf.mxu0  ;;  %v5612_v7 = vpop.f32.mrf.mxu1 }
 0x22e   : > { %5856 = vst [vmem:[#allocation11_spill] sm:$0xff] %v5610_v34  ;;  %v5614_v4 = vadd.f32 %v4229_v14, %v2094_v30 }
 0x22f   : > { %v5616_v63 = vpop.f32.mrf.mxu0  ;;  %v5618_v60 = vpop.f32.mrf.mxu1 }
 0x230   : > { %5857 = vst [vmem:[#allocation12_spill] sm:$0xff] %v5616_v63 }
 0x231   : > { %v5620_v51 = vpop.f32.mrf.mxu0  ;;  %v5622_v37 = vpop.f32.mrf.mxu1 }
 0x232   : > { %5858 = vst [vmem:[#allocation13_spill] sm:$0xff] %v5620_v51 }
 0x233   : > { %v5624_v45 = vpop.f32.mrf.mxu0  ;;  %v4201_v58 = vpop.f32.mrf.mxu1 }
 0x234   : > { %5859 = vst [vmem:[#allocation14_spill] sm:$0xff] %v5624_v45  ;;  %v2098_v38 = vadd.f32 %v4201_v58, %v1615_v56 }
 0x235   : > { %v5626_v20 = vpop.f32.mrf.mxu0  ;;  %v5628_v32 = vpop.f32.mrf.mxu1 }
 0x236   : > { %5860 = vst [vmem:[#allocation15_spill] sm:$0xff] %v5626_v20  ;;  %v5630_v10 = vadd.f32 %v4233_v46, %v2098_v38 }
 0x237   : > { %v5632_v14 = vpop.f32.mrf.mxu0  ;;  %v5634_v41 = vpop.f32.mrf.mxu1 }
 0x238   : > { %5861 = vst [vmem:[#allocation16_spill] sm:$0xff] %v5630_v10  ;;  %5862 = vst [vmem:[#allocation17_spill] sm:$0xff] %v5632_v14 }
 0x239   : > { %5863 = vst [vmem:[#allocation18_spill] sm:$0xff] %v5634_v41  ;;  %v5636_v36 = vpop.f32.mrf.mxu0  ;;  %v5638_v39 = vpop.f32.mrf.mxu1  ;;  %v2087_v41 = vadd.f32 %v4190_v53, %v5537_v9 }
 0x23a   : > { %5864 = vst [vmem:[#allocation19_spill] sm:$0xff] %v5636_v36  ;;  %5865 = vst [vmem:[#allocation20_spill] sm:$0xff] %v5638_v39 }
 0x23b   : > { %v5640_v43 = vpop.f32.mrf.mxu0  ;;  %v4253_v28 = vpop.f32.mrf.mxu1  ;;  %v2269_v50 = vadd.f32 %v5534_v3, %v2087_v41  ;;  %v2089_v3 = vadd.f32 %v5606_v25, %v5559_v26 }
 0x23c   : > { %5866 = vst [vmem:[#allocation21_spill] sm:$0xff] %v5640_v43  ;;  %v2086_v43 = vadd.f32 %v4189_v23, %v5527_v1 }
 0x23d   : > { %v2385_v30 = vpop.f32.mrf.mxu1  ;;  %v4349_v55 = vpop.f32.mrf.mxu0 }
 0x23e   : > { %v2268_v13 = vadd.f32 %v5523_v35, %v2086_v43 }
 0x23f   : > { %v4254_v56 = vpop.f32.mrf.mxu1  ;;  %v3072_v20 = vpop.f32.mrf.mxu0 }
 0x240   : > { %v2450_v0 = vadd.f32 %v4253_v28, %v2268_v13  ;;  %v2451_v9 = vadd.f32 %v4254_v56, %v2269_v50 }
 0x241   : > { %v2388_v58 = vpop.f32.mrf.mxu1  ;;  %v4350_v46 = vpop.f32.mrf.mxu0 }
 0x242   : > { %v2773_v53 = vadd.f32 %v5588_v47, %v2450_v0  ;;  %v2774_v0 = vadd.f32 %v5592_v29, %v2451_v9 }
 0x243   : > { %v4257_v45 = vpop.f32.mrf.mxu1  ;;  %v3075_v14 = vpop.f32.mrf.mxu0 }
 0x245   : > { %v2401_v51 = vpop.f32.mrf.mxu1  ;;  %v5646_v36 = vpop.f32.mrf.mxu0 }
 0x247   : > { %v4258_v38 = vpop.f32.mrf.mxu1  ;;  %v5654_v34 = vpop.f32.mrf.mxu0 }
 0x249   : > { %v2404_v10 = vpop.f32.mrf.mxu1  ;;  %v5664_v1 = vpop.f32.mrf.mxu0 }
 0x24b   : > { %v5642_v12 = vpop.f32.mrf.mxu1 }
 0x24d   : > { %v5644_v54 = vpop.f32.mrf.mxu1 }
 0x24e   : > { %5867 = vst [vmem:[#allocation22_spill] sm:$0xff] %v5644_v54  ;;  %v2085_v54 = vadd.f32 %v2024_v48, %v5541_v16  ;;  %v5674_v16 = vpop.f32.mrf.mxu0 }
 0x24f   : > { %v5648_v39 = vpop.f32.mrf.mxu1 }
 0x250   : > { %5868 = vst [vmem:[#allocation23_spill] sm:$0xff] %v5648_v39  ;;  %v2266_v39 = vadd.f32 %v5529_v18, %v2084_v61  ;;  %v2267_v35 = vadd.f32 %v5539_v17, %v2085_v54  ;;  %v2454_v17 = vadd.f32 %v4257_v45, %v5598_v15  ;;  %v5684_v43 = vpop.f32.mrf.mxu0  ;;  %v2271_v15 = vadd.f32 %v5556_v22, %v2089_v3  ;;  %v5875_v3 = vld [vmem:[#allocation18_spill] sm:$0xff] }
 0x251   : > { %v5651_v63 = vpop.f32.mrf.mxu1 }
 0x252   : > { %5869 = vst [vmem:[#allocation24_spill] sm:$0xff] %v5651_v63  ;;  %v2448_v2 = vadd.f32 %v2385_v30, %v2266_v39  ;;  %v2449_v18 = vadd.f32 %v2388_v58, %v2267_v35  ;;  %v2091_v39 = vadd.f32 %v5602_v31, %v5554_v21  ;;  %v2453_v56 = vadd.f32 %v2404_v10, %v2271_v15 }
 0x253   : > { %v5656_v8 = vpop.f32.mrf.mxu1 }
 0x254   : > { %5870 = vst [vmem:[#allocation25_spill] sm:$0xff] %v5656_v8  ;;  %v2088_v8 = vadd.f32 %v2037_v6, %v5548_v44  ;;  %v2771_v48 = vadd.f32 %v5590_v40, %v2448_v2  ;;  %v5689_v40 = vld [vmem:[%s5828_s4] ss:$0 sm:$0xff]  ;;  %v2273_v29 = vadd.f32 %v5550_v11, %v2091_v39  ;;  %v5874_v39 = vld [vmem:[#allocation6_spill] sm:$0xff] }
 0x255   : > { %v5660_v27 = vpop.f32.mrf.mxu1 }
 0x256   : > { %v2270_v44 = vadd.f32 %v5544_v62, %v2088_v8  ;;  %v2772_v62 = vadd.f32 %v5594_v49, %v2449_v18  ;;  %v2092_v8 = vadd.f32 %v5612_v7, %v5564_v19  ;;  %v2455_v30 = vadd.f32 %v4258_v38, %v2273_v29  ;;  %v5700_v49 = vpop.f32.mrf.mxu0 }
 0x257   : > { %v5666_v23 = vpop.f32.mrf.mxu1 }
 0x258   : > { %v2452_v41 = vadd.f32 %v2401_v51, %v2270_v44  ;;  %v4358_v35 = vpop.f32.mrf.mxu0  ;;  %v2099_v44 = vadd.f32 %v5875_v3, %v5874_v39 }
 0x259   : > { %v5670_v63 = vpop.f32.mrf.mxu1 }
 0x25a   : > { %v2775_v19 = vadd.f32 %v5600_v33, %v2452_v41  ;;  %v5878_v41 = vld [vmem:[#allocation11_spill] sm:$0xff] }
 0x25b   : > { %v4317_v13 = vpop.f32.mrf.mxu1 }
 0x25c   : > { %v2955_v61 = vadd.f32 %v4317_v13, %v2773_v53 }
 0x25d   : > { %v2890_v6 = vpop.f32.mrf.mxu1 }
 0x25e   : > { %v3137_v54 = vadd.f32 %v4349_v55, %v2955_v61  ;;  %v2953_v47 = vadd.f32 %v2890_v6, %v2771_v48  ;;  %v2095_v55 = vadd.f32 %v5618_v60, %v5568_v57  ;;  %v2093_v60 = vadd.f32 %v5622_v37, %v5572_v59  ;;  %v5871_v59 = vld [vmem:[#allocation9_spill] sm:$0xff]  ;;  %v5876_v6 = vld [vmem:[#allocation3_spill] sm:$0xff] }
 0x25f   : > { %v4318_v21 = vpop.f32.mrf.mxu1  ;;  %v2778_v37 = vadd.f32 %v5871_v59, %v2455_v30  ;;  %v5882_v30 = vld [vmem:[#allocation8_spill] sm:$0xff] }
 0x260   : > { %v3135_v31 = vadd.f32 %v3072_v20, %v2953_v47  ;;  %v2956_v26 = vadd.f32 %v4318_v21, %v2774_v0  ;;  %v3160_v51 = vadd.f32 %v5689_v40, %v3137_v54  ;;  %v2777_v20 = vadd.f32 %v5596_v5, %v2454_v17 }
 0x261   : > { %v2893_v25 = vpop.f32.mrf.mxu1  ;;  %v2274_v5 = vadd.f32 %v5561_v42, %v2092_v8  ;;  %v2277_v10 = vadd.f32 %v5566_v52, %v2095_v55  ;;  %v5873_v42 = vld [vmem:[#allocation22_spill] sm:$0xff]  ;;  %v2275_v17 = vadd.f32 %v5876_v6, %v2093_v60  ;;  %v5886_v60 = vld [vmem:[#allocation25_spill] sm:$0xff] }
 0x262   : > { %v3138_v45 = vadd.f32 %v4350_v46, %v2956_v26  ;;  %v2954_v28 = vadd.f32 %v2893_v25, %v2772_v62  ;;  %v3158_v57 = vadd.f32 %v5689_v40, %v3135_v31  ;;  %v2458_v46 = vadd.f32 %v5642_v12, %v5614_v4  ;;  %v5872_v12 = vld [vmem:[#allocation10_spill] sm:$0xff]  ;;  %v3107_v26 = vpop.f32.mrf.mxu0  ;;  %v5879_v62 = vld [vmem:[#allocation4_spill] sm:$0xff] }
 0x263   : > { %v4321_v58 = vpop.f32.mrf.mxu1  ;;  %v3176_v2 = vmax.f32 %v3160_v51, 0.0  ;;  %v2776_v4 = vadd.f32 %v5872_v12, %v2453_v56  ;;  %v2456_v18 = vadd.f32 %v5873_v42, %v2274_v5  ;;  %v5880_v25 = vld [vmem:[#allocation24_spill] sm:$0xff] }
 0x264   : > { %v3161_v11 = vadd.f32 %v5689_v40, %v3138_v45  ;;  %v3136_v7 = vadd.f32 %v3075_v14, %v2954_v28  ;;  %v2959_v22 = vadd.f32 %v4321_v58, %v2777_v20  ;;  %v2096_v14 = vadd.f32 %v5628_v32, %v5576_v24  ;;  %v5881_v28 = vld [vmem:[#allocation12_spill] sm:$0xff] }
 0x265   : > { %v2906_v38 = vpop.f32.mrf.mxu1  ;;  %v3174_v52 = vmax.f32 %v3158_v57, 0.0  ;;  %v2781_v21 = vadd.f32 %v5878_v41, %v2458_v46  ;;  %v2457_v51 = vadd.f32 %v5880_v25, %v2275_v17  ;;  %v2779_v20 = vadd.f32 %v5881_v28, %v2456_v18  ;;  %v5883_v56 = vld [vmem:[#allocation20_spill] sm:$0xff] }
 0x266   : > { %v3177_v50 = vmax.f32 %v3161_v11, 0.0  ;;  %v3159_v33 = vadd.f32 %v5689_v40, %v3136_v7  ;;  %v2957_v9 = vadd.f32 %v2906_v38, %v2775_v19  ;;  %v3141_v53 = vadd.f32 %v5646_v36, %v2959_v22  ;;  %v5877_v36 = vld [vmem:[#allocation23_spill] sm:$0xff]  ;;  %v5884_v19 = vld [vmem:[#allocation5_spill] sm:$0xff] }
 0x267   : > { %v4322_v13 = vpop.f32.mrf.mxu1  ;;  %v2459_v47 = vadd.f32 %v5877_v36, %v2277_v10  ;;  %v2278_v8 = vadd.f32 %v5879_v62, %v2096_v14  ;;  %v2097_v58 = vadd.f32 %v5883_v56, %v5882_v30  ;;  %v2281_v57 = vadd.f32 %v5884_v19, %v2099_v44  ;;  %v5887_v10 = vld [vmem:[#allocation13_spill] sm:$0xff]  ;;  %v5890_v44 = vld [vmem:[#allocation15_spill] sm:$0xff] }
 0x268   : > { %v3191_v61 = vpack.c.bf16 %v3177_v50, %v3176_v2  ;;  %v3175_v48 = vmax.f32 %v3159_v33, 0.0  ;;  %v3139_v24 = vadd.f32 %v5654_v34, %v2957_v9  ;;  %v2960_v32 = vadd.f32 %v4322_v13, %v2778_v37  ;;  %v4361_v2 = vpop.f32.mrf.mxu0  ;;  %v5888_v13 = vld [vmem:[#allocation14_spill] sm:$0xff] }
 0x269   : > { %v2909_v54 = vpop.f32.mrf.mxu1  ;;  %v3164_v55 = vadd.f32 %v5689_v40, %v3141_v53  ;;  %v2782_v38 = vadd.f32 %v5887_v10, %v2459_v47  ;;  %v2460_v50 = vadd.f32 %v5660_v27, %v2278_v8  ;;  %v2780_v12 = vadd.f32 %v5888_v13, %v2457_v51 }
 0x26a   : > { %v2958_v0 = vadd.f32 %v2909_v54, %v2776_v4  ;;  %v3190_v31 = vpack.c.bf16 %v3175_v48, %v3174_v52  ;;  %v3142_v29 = vadd.f32 %v5664_v1, %v2960_v32  ;;  %v3162_v11 = vadd.f32 %v5689_v40, %v3139_v24  ;;  %v5885_v1 = vld [vmem:[#allocation16_spill] sm:$0xff]  ;;  %v5889_v48 = vld [vmem:[#allocation7_spill] sm:$0xff]  ;;  %v3120_v17 = vpop.f32.mrf.mxu0  ;;  %v5891_v54 = vld [vmem:[#allocation17_spill] sm:$0xff] }
 0x26b   : > { %v4325_v15 = vpop.f32.mrf.mxu1  ;;  %v2462_v46 = vadd.f32 %v5886_v60, %v5885_v1  ;;  %v3180_v33 = vmax.f32 %v3164_v55, 0.0  ;;  %v2463_v4 = vadd.f32 %v5666_v23, %v2281_v57  ;;  %v2279_v39 = vadd.f32 %v5889_v48, %v2097_v58 }
 0x26c   : > { %v3140_v34 = vadd.f32 %v5674_v16, %v2958_v0  ;;  %v2963_v45 = vadd.f32 %v4325_v15, %v2781_v21  ;;  %4379 = vmatprep.mubr.bf16.mxu0 %v3190_v31  ;;  %v3165_v7 = vadd.f32 %v5689_v40, %v3142_v29  ;;  %v3178_v42 = vmax.f32 %v3162_v11, 0.0  ;;  %v5892_v21 = vld [vmem:[#allocation19_spill] sm:$0xff]  ;;  %v4362_v15 = vpop.f32.mrf.mxu0 }
 0x26d   : > { %v2922_v22 = vpop.f32.mrf.mxu1  ;;  %4380 = vmatmul.mubr.bf16.vlgmr.msra.gmra.mxu0 %v3191_v61  ;;  %v2785_v6 = vadd.f32 %v5890_v44, %v2462_v46  ;;  %v2783_v36 = vadd.f32 %v5891_v54, %v2460_v50  ;;  %v2461_v23 = vadd.f32 %v5670_v63, %v2279_v39  ;;  %v2786_v31 = vadd.f32 %v5892_v21, %v2463_v4 }
 0x26e   : > { %v3163_v16 = vadd.f32 %v5689_v40, %v3140_v34  ;;  %v2961_v5 = vadd.f32 %v2922_v22, %v2779_v20  ;;  %v3181_v9 = vmax.f32 %v3165_v7, 0.0  ;;  %v3145_v14 = vadd.f32 %v5684_v43, %v2963_v45  ;;  %v3123_v11 = vpop.f32.mrf.mxu0 }
 0x26f   : > { %v4326_v53 = vpop.f32.mrf.mxu1 }
 0x270   : > { %v3179_v59 = vmax.f32 %v3163_v16, 0.0  ;;  %v2964_v37 = vadd.f32 %v4326_v53, %v2782_v38  ;;  %v3193_v18 = vpack.c.bf16 %v3181_v9, %v3180_v33  ;;  %v3143_v52 = vadd.f32 %v5700_v49, %v2961_v5  ;;  %v5761_v33 = vld [vmem:[%s5830_s6] ss:$0 sm:$0xff]  ;;  %v4567_v9 = vld [vmem:[%s4724_s20 + $0x8] sm:$0xff]  }
 0x271   : > { %v2925_v61 = vpop.f32.mrf.mxu1  ;;  %v3168_v43 = vadd.f32 %v5689_v40, %v3145_v14  ;;  %v3368_v14 = vunpack.c.l.bf16 %v4567_v9 }
 0x272   : > { %v3146_v3 = vadd.f32 %v4358_v35, %v2964_v37  ;;  %v2962_v27 = vadd.f32 %v2925_v61, %v2780_v12  ;;  %v3192_v32 = vpack.c.bf16 %v3179_v59, %v3178_v42  ;;  %v3166_v41 = vadd.f32 %v5689_v40, %v3143_v52  ;;  %v4568_v37 = vld [vmem:[%s4724_s20] sm:$0xff]  }
 0x273   : > { %v4329_v24 = vpop.f32.mrf.mxu1  ;;  %v3184_v25 = vmax.f32 %v3168_v43, 0.0  ;;  %v3369_v42 = vunpack.c.h.bf16 %v4567_v9  ;;  %v3367_v39 = vunpack.c.h.bf16 %v4568_v37  ;;  %v4573_v9 = vld [vmem:[%s4724_s20 + $0x38] sm:$0xff]  }
 0x274   : > { %v3169_v47 = vadd.f32 %v5689_v40, %v3146_v3  ;;  %v3144_v0 = vadd.f32 %v3107_v26, %v2962_v27  ;;  %v2967_v49 = vadd.f32 %v4329_v24, %v2785_v6  ;;  %4383 = vmatprep.mubr.bf16.mxu1 %v3192_v32  ;;  %v5893_v26 = vld [vmem:[#allocation21_spill] sm:$0xff]  ;;  %v3182_v20 = vmax.f32 %v3166_v41, 0.0 }
 0x275   : > { %v2938_v35 = vpop.f32.mrf.mxu1  ;;  %4384 = vmatmul.mubr.bf16.vlgmr.msra.gmra.mxu1 %v3193_v18  ;;  %v2784_v28 = vadd.f32 %v5893_v26, %v2461_v23  ;;  %v4570_v23 = vld [vmem:[%s4724_s20 + $0x10] sm:$0xff]  }
 0x276   : > { %v3185_v62 = vmax.f32 %v3169_v47, 0.0  ;;  %v3167_v8 = vadd.f32 %v5689_v40, %v3144_v0  ;;  %v3149_v55 = vadd.f32 %v4361_v2, %v2967_v49  ;;  %v2965_v29 = vadd.f32 %v2938_v35, %v2783_v36 }
 0x277   : > { %v4330_v51 = vpop.f32.mrf.mxu1  ;;  %v3370_v47 = vunpack.c.l.bf16 %v4570_v23 }
 0x278   : > { %v3183_v63 = vmax.f32 %v3167_v8, 0.0  ;;  %v3147_v34 = vadd.f32 %v3120_v17, %v2965_v29  ;;  %v2968_v45 = vadd.f32 %v4330_v51, %v2786_v31  ;;  %v3195_v56 = vpack.c.bf16 %v3185_v62, %v3184_v25  ;;  %v4569_v17 = vld [vmem:[%s4724_s20 + $0x18] sm:$0xff]  }
 0x279   : > { %v2941_v30 = vpop.f32.mrf.mxu1  ;;  %v3172_v58 = vadd.f32 %v5689_v40, %v3149_v55  ;;  %v3372_v43 = vunpack.c.l.bf16 %v4569_v17  ;;  %v3373_v21 = vunpack.c.h.bf16 %v4569_v17  ;;  %v3371_v29 = vunpack.c.h.bf16 %v4570_v23 }
 0x27a   : > { %v3150_v19 = vadd.f32 %v4362_v15, %v2968_v45  ;;  %v2966_v57 = vadd.f32 %v2941_v30, %v2784_v28  ;;  %v3194_v7 = vpack.c.bf16 %v3183_v63, %v3182_v20  ;;  %v3170_v22 = vadd.f32 %v5689_v40, %v3147_v34  ;;  %v4571_v34 = vld [vmem:[%s4724_s20 + $0x28] sm:$0xff]  }
 0x27b   : > { %v3188_v46 = vmax.f32 %v3172_v58, 0.0  ;;  %v3376_v45 = vunpack.c.l.bf16 %v4571_v34 }
 0x27c   : > { %v3173_v1 = vadd.f32 %v5689_v40, %v3150_v19  ;;  %v3148_v60 = vadd.f32 %v3123_v11, %v2966_v57  ;;  %4387 = vmatprep.mubr.bf16.mxu1 %v3194_v7  ;;  %v3186_v10 = vmax.f32 %v3170_v22, 0.0  ;;  %v3377_v22 = vunpack.c.h.bf16 %v4571_v34 }
 0x27d   : > { %4388 = vmatmul.mubr.bf16.gmra.mxu1 %v3195_v56  ;;  %v4572_v56 = vld [vmem:[%s4724_s20 + $0x20] sm:$0xff]  }
 0x27e   : > { %v3189_v16 = vmax.f32 %v3173_v1, 0.0  ;;  %v3171_v5 = vadd.f32 %v5689_v40, %v3148_v60  ;;  %v3366_v40 = vunpack.c.l.bf16 %v4568_v37  ;;  %v3374_v58 = vunpack.c.l.bf16 %v4572_v56 }
 0x280   : > { %v3187_v38 = vmax.f32 %v3171_v5, 0.0  ;;  %v3197_v2 = vpack.c.bf16 %v3189_v16, %v3188_v46  ;;  %v3375_v5 = vunpack.c.h.bf16 %v4572_v56 }
 0x282   : > { %v3196_v50 = vpack.c.bf16 %v3187_v38, %v3186_v10 }
 0x284   : > { %4391 = vmatprep.mubr.bf16.mxu1 %v3196_v50 }
 0x285   : > { %4392 = vmatmul.mubr.bf16.gmra.mxu1 %v3197_v2 }
 0x32d   : > { %v4381_v53 = vpop.f32.mrf.mxu0 }
 0x32e   : > { %v3312_v59 = vadd.f32 %v4381_v53, %v5761_v33 }
 0x32f   : > { %v3303_v13 = vpop.f32.mrf.mxu0 }
 0x330   : > { %v3384_v12 = vadd.f32 %v3368_v14, %v3312_v59  ;;  %v3304_v4 = vadd.f32 %v5761_v33, %v3303_v13  ;;  %v3380_v14 = vunpack.c.l.bf16 %v4573_v9  ;;  %v4574_v13 = vld [vmem:[%s4724_s20 + $0x30] sm:$0xff]  }
 0x331   : > { %v4382_v18 = vpop.f32.mrf.mxu0 }
 0x332   : > { %v3400_v52 = vmax.f32 %v3384_v12, 0.0  ;;  %v3382_v61 = vadd.f32 %v3366_v40, %v3304_v4  ;;  %v3315_v48 = vadd.f32 %v4382_v18, %v5761_v33  ;;  %v3378_v12 = vunpack.c.l.bf16 %v4574_v13 }
 0x333   : > { %v3306_v3 = vpop.f32.mrf.mxu0 }
 0x334   : > { %3416 = vst [vmem:[%s5771_s21 + $0x10] sm:$0xff] %v3400_v52  ;;  %v3398_v27 = vmax.f32 %v3382_v61, 0.0  ;;  %v3385_v44 = vadd.f32 %v3369_v42, %v3315_v48  ;;  %v3307_v6 = vadd.f32 %v5761_v33, %v3306_v3  ;;  %v3381_v61 = vunpack.c.h.bf16 %v4573_v9 }
 0x335   : > { %v4385_v54 = vpop.f32.mrf.mxu1 }
 0x336   : > { %3414 = vst [vmem:[%s5771_s21] sm:$0xff] %v3398_v27  ;;  %v3401_v24 = vmax.f32 %v3385_v44, 0.0  ;;  %v3383_v32 = vadd.f32 %v3367_v39, %v3307_v6  ;;  %v3328_v36 = vadd.f32 %v4385_v54, %v5761_v33  ;;  %v3379_v44 = vunpack.c.h.bf16 %v4574_v13 }
 0x337   : > { %v3319_v49 = vpop.f32.mrf.mxu1 }
 0x338   : > { %3417 = vst [vmem:[%s5771_s21 + $0x18] sm:$0xff] %v3401_v24  ;;  %v3399_v0 = vmax.f32 %v3383_v32, 0.0  ;;  %v3388_v41 = vadd.f32 %v3372_v43, %v3328_v36  ;;  %v3320_v35 = vadd.f32 %v5761_v33, %v3319_v49 }
 0x339   : > { %v4386_v31 = vpop.f32.mrf.mxu1 }
 0x33a   : > { %3415 = vst [vmem:[%s5771_s21 + $0x8] sm:$0xff] %v3399_v0  ;;  %v3404_v62 = vmax.f32 %v3388_v41, 0.0  ;;  %v3386_v8 = vadd.f32 %v3370_v47, %v3320_v35  ;;  %v3331_v55 = vadd.f32 %v4386_v31, %v5761_v33 }
 0x33b   : > { %v3322_v15 = vpop.f32.mrf.mxu1 }
 0x33c   : > { %3420 = vst [vmem:[%s5771_s21 + $0x30] sm:$0xff] %v3404_v62  ;;  %v3402_v25 = vmax.f32 %v3386_v8, 0.0  ;;  %v3389_v51 = vadd.f32 %v3373_v21, %v3331_v55  ;;  %v3323_v63 = vadd.f32 %v5761_v33, %v3322_v15 }
 0x33d   : > { %v4389_v26 = vpop.f32.mrf.mxu1 }
 0x33e   : > { %3418 = vst [vmem:[%s5771_s21 + $0x20] sm:$0xff] %v3402_v25  ;;  %v3405_v28 = vmax.f32 %v3389_v51, 0.0  ;;  %v3387_v20 = vadd.f32 %v3371_v29, %v3323_v63  ;;  %v3344_v30 = vadd.f32 %v4389_v26, %v5761_v33 }
 0x33f   : > { %v3335_v19 = vpop.f32.mrf.mxu1 }
 0x340   : > { %3421 = vst [vmem:[%s5771_s21 + $0x38] sm:$0xff] %v3405_v28  ;;  %v3403_v57 = vmax.f32 %v3387_v20, 0.0  ;;  %v3392_v11 = vadd.f32 %v3376_v45, %v3344_v30  ;;  %v3336_v7 = vadd.f32 %v5761_v33, %v3335_v19 }
 0x341   : > { %v4390_v1 = vpop.f32.mrf.mxu1 }
 0x342   : > { %3419 = vst [vmem:[%s5771_s21 + $0x28] sm:$0xff] %v3403_v57  ;;  %v3408_v60 = vmax.f32 %v3392_v11, 0.0  ;;  %v3390_v46 = vadd.f32 %v3374_v58, %v3336_v7  ;;  %v3347_v16 = vadd.f32 %v4390_v1, %v5761_v33 }
 0x343   : > { %v3338_v10 = vpop.f32.mrf.mxu1 }
 0x344   : > { %3424 = vst [vmem:[%s5771_s21 + $0x50] sm:$0xff] %v3408_v60  ;;  %v3406_v38 = vmax.f32 %v3390_v46, 0.0  ;;  %v3393_v2 = vadd.f32 %v3377_v22, %v3347_v16  ;;  %v3339_v50 = vadd.f32 %v5761_v33, %v3338_v10 }
 0x345   : > { %v4393_v53 = vpop.f32.mrf.mxu1 }
 0x346   : > { %3422 = vst [vmem:[%s5771_s21 + $0x40] sm:$0xff] %v3406_v38  ;;  %v3409_v59 = vmax.f32 %v3393_v2, 0.0  ;;  %v3391_v37 = vadd.f32 %v3375_v5, %v3339_v50  ;;  %v3360_v40 = vadd.f32 %v4393_v53, %v5761_v33 }
 0x347   : > { %v3351_v4 = vpop.f32.mrf.mxu1 }
 0x348   : > { %3425 = vst [vmem:[%s5771_s21 + $0x58] sm:$0xff] %v3409_v59  ;;  %v3407_v42 = vmax.f32 %v3391_v37, 0.0  ;;  %v3396_v18 = vadd.f32 %v3380_v14, %v3360_v40  ;;  %v3352_v52 = vadd.f32 %v5761_v33, %v3351_v4 }
 0x349   : > { %v4394_v48 = vpop.f32.mrf.mxu1 }
 0x34a   : > { %3423 = vst [vmem:[%s5771_s21 + $0x48] sm:$0xff] %v3407_v42  ;;  %v3412_v39 = vmax.f32 %v3396_v18, 0.0  ;;  %v3394_v3 = vadd.f32 %v3378_v12, %v3352_v52  ;;  %v3363_v27 = vadd.f32 %v4394_v48, %v5761_v33 }
 0x34b   : > { %v3354_v6 = vpop.f32.mrf.mxu1 }
 0x34c   : > { %3428 = vst [vmem:[%s5771_s21 + $0x70] sm:$0xff] %v3412_v39  ;;  %v3410_v17 = vmax.f32 %v3394_v3, 0.0  ;;  %v3397_v43 = vadd.f32 %v3381_v61, %v3363_v27  ;;  %v3355_v24 = vadd.f32 %v5761_v33, %v3354_v6 }
 0x34e   : > { %3426 = vst [vmem:[%s5771_s21 + $0x60] sm:$0xff] %v3410_v17  ;;  %v3413_v32 = vmax.f32 %v3397_v43, 0.0  ;;  %v3395_v54 = vadd.f32 %v3379_v44, %v3355_v24 }
 0x350   : > { %3429 = vst [vmem:[%s5771_s21 + $0x78] sm:$0xff] %v3413_v32  ;;  %v3411_v36 = vmax.f32 %v3395_v54, 0.0 }
 0x352   : > { %3427 = vst [vmem:[%s5771_s21 + $0x68] sm:$0xff] %v3411_v36 }
 0x353 PF: > { %s17_s28 = sadd.s32 1, %s4613_s28   ;;  %s5894_s24 = smov %s4605_s26 }
 0x354   : > { %p14_p11 = scmp.ge.s32.totalorder %s17_s28, 6   ;;  %s5895_s25 = smov %s4609_s27 }
 0x355   : > { %s5896_s26 = smov %s5899_s29  ;;  %s5897_s27 = smov %s5903_s30 }
 0x356   :  { %16 = sbr.rel (!%p14_p11) target bundleno = 3 (0x3), region = 89 }

</bundles_post_ra>
